<compile_context>
chip_gen: v7x
topology: tpu7x:2x2x1
jax: 0.10.0
libtpu: 0.0.40
codegen_flags: <defaults>
</compile_context>

<pallas_src>
import math
import numpy as np
import jax
import jax.numpy as jnp
from jax.experimental import pallas as pl
from jax.experimental.pallas import tpu as pltpu

# ---- problem sizes (small, consistent with the module) ----
B = 2           # batch
S = 16          # sequence length
D = 64          # model dim
NUM_HEADS = 8
HEAD_DIM = D // NUM_HEADS          # 8
ROT_DIM = HEAD_DIM // 2            # 4  -> RotaryEmbedding(dim = D/(num_heads*2))
HIDDEN = 128                       # ffn hidden dim
EPS = 1e-5                         # nn.LayerNorm default eps
BS = B * S                         # folded batch*seq rows
QKW = 4 * D                        # [Wq*s | Wq*s@Pm | Wk | Wk@Pm] columns
FUSED_W = QKW + NUM_HEADS * D      # + per-head Wv@Wo folds  -> 768 columns


def _layer_norm(x, g, b):
    # single-pass: mean and E[x^2] together, var = E[x^2] - mean^2
    mu = jnp.mean(x, axis=-1, keepdims=True)
    ms = jnp.mean(x * x, axis=-1, keepdims=True)
    var = ms - mu * mu
    return (x - mu) * jax.lax.rsqrt(var + EPS) * g + b


def _gelu_exact(x):
    return 0.5 * x * (1.0 + jax.lax.erf(x * (1.0 / math.sqrt(2.0))))


def encoder_layer_kernel(x_ref, nm_ref, trig_ref, wqkv_ref, bqkv_ref, pk_ref,
                         w1_ref, fb1_ref, w2_ref, out_ref):
    x = x_ref[...]                        # (BS, D) float32, batch folded
    neg_mask = nm_ref[...]                # (B, S, S) additive mask (0 / -1e9)
    cos = trig_ref[0]                     # (BS, D)
    sin = trig_ref[1]                     # (BS, D)
    pk = pk_ref[...]                      # (6, D) packed row params
    g1, be1 = pk[0:1, :], pk[1:2, :]
    g2, be2 = pk[2:3, :], pk[3:4, :]
    bvo, fb2 = pk[4:5, :], pk[5:6, :]

    # ---- pre-norm 1 ----
    xn = _layer_norm(x, g1, be1)

    # ---- one wide fused projection: (BS,64) x (64,768) ----
    # columns: [ Wq*scale | (Wq*scale)@Pm | Wk | Wk@Pm | Wvo_0 | ... | Wvo_7 ]
    qkv = jnp.dot(xn, wqkv_ref[...], preferred_element_type=jnp.float32) + bqkv_ref[...]
    q = qkv[:, 0 * D:1 * D] * cos + qkv[:, 1 * D:2 * D] * sin   # rotary, already scaled
    k = qkv[:, 2 * D:3 * D] * cos + qkv[:, 3 * D:4 * D] * sin
    vf = qkv[:, QKW:]                                            # (BS, H*D) folded V·Wo

    q3 = q.reshape(B, S, D)
    k3 = k.reshape(B, S, D)
    vf3 = vf.reshape(B, S, NUM_HEADS * D)

    # ---- per-head attention; PV is lane-dense (N=64), no concat, no Wo matmul ----
    attn = None
    for h in range(NUM_HEADS):
        lo = h * HEAD_DIM
        qh = q3[:, :, lo:lo + HEAD_DIM]                          # (B, S, hd)
        kh = k3[:, :, lo:lo + HEAD_DIM]
        vh = vf3[:, :, h * D:(h + 1) * D]                        # (B, S, D)
        s = jnp.einsum('bqd,bkd->bqk', qh, kh,
                       preferred_element_type=jnp.float32) + neg_mask   # (B, S, S)
        s = s - jnp.max(s, axis=-1, keepdims=True)               # kept for tolerance safety
        p = jnp.exp(s)
        p = p * pl.reciprocal(jnp.sum(p, axis=-1, keepdims=True), approx=False)
        oh = jnp.einsum('bqk,bkd->bqd', p, vh,
                        preferred_element_type=jnp.float32)      # (B, S, D)
        attn = oh if attn is None else attn + oh
    attn = attn.reshape(BS, D) + bvo                             # + (bv@Wo + bo)

    # ---- residual 1 (dropout p=0 -> identity) ----
    x1 = x + attn

    # ---- pre-norm 2 + FFN: Linear -> GELU(exact) -> Linear ----
    xn2 = _layer_norm(x1, g2, be2)
    hdn = jnp.dot(xn2, w1_ref[...], preferred_element_type=jnp.float32) + fb1_ref[...]
    hdn = _gelu_exact(hdn)
    y = jnp.dot(hdn, w2_ref[...], preferred_element_type=jnp.float32) + fb2

    # ---- residual 2 (dropout p=0 -> identity) ----
    out_ref[...] = (x1 + y).astype(out_ref.dtype)


def _prepare_fused_inputs(params, mask, cos, sin, pm):
    """One-time parameter/table preprocessing, hoisted out of the per-call path."""
    scale = 1.0 / math.sqrt(HEAD_DIM)
    wq_s = params["wq"] * scale
    bq_s = params["bq"] * scale
    # per-head fold of Wo into the V projection
    wvo = [params["wv"][:, h * HEAD_DIM:(h + 1) * HEAD_DIM]
           @ params["wo"][h * HEAD_DIM:(h + 1) * HEAD_DIM, :] for h in range(NUM_HEADS)]
    wqkv = jnp.concatenate([wq_s, wq_s @ pm, params["wk"], params["wk"] @ pm] + wvo,
                           axis=1)                                         # (D, 768)
    bqkv = jnp.concatenate([bq_s, bq_s @ pm, params["bk"], params["bk"] @ pm,
                            jnp.zeros((1, NUM_HEADS * D), jnp.float32)], axis=1)  # (1, 768)
    bvo = params["bv"] @ params["wo"] + params["bo"]                       # (1, D)
    packed = jnp.concatenate([params["g1"], params["be1"], params["g2"], params["be2"],
                              bvo, params["fb2"]], axis=0)                 # (6, D)
    cosf = jnp.tile(cos, (B, 1))                                           # (BS, D)
    sinf = jnp.tile(sin, (B, 1))
    trig = jnp.stack([cosf, sinf], axis=0)                                 # (2, BS, D)
    neg_mask = jnp.where(mask == 0, -1e9, 0.0).astype(jnp.float32)         # (B, S, S)
    return (neg_mask, trig, wqkv, bqkv, packed,
            params["w1"], params["fb1"], params["w2"])


def _full_spec(shape):
    nd = len(shape)
    return pl.BlockSpec(shape, lambda i, _nd=nd: (0,) * _nd)


@jax.jit
def _encoder_layer_call(x, neg_mask, trig, wqkv, bqkv, packed, w1, fb1, w2):
    xf = x.reshape(BS, D)                 # fold batch: M = B*S rows, one grid step

    operands = (xf, neg_mask, trig, wqkv, bqkv, packed, w1, fb1, w2)
    grid_spec = pltpu.PrefetchScalarGridSpec(
        num_scalar_prefetch=0,
        grid=(1,),                        # single step: fixed overhead paid once
        in_specs=[_full_spec(a.shape) for a in operands],
        out_specs=pl.BlockSpec((BS, D), lambda i: (0, 0)),
    )

    flops = (2 * BS * D * FUSED_W                                    # fused QKV + Vfold
             + NUM_HEADS * (2 * B * S * S * HEAD_DIM + 2 * B * S * S * D)  # QK^T + PV
             + 4 * BS * D * HIDDEN)                                  # FFN
    transcendentals = B * NUM_HEADS * S * S + BS * HIDDEN + 2 * BS
    bytes_accessed = 4 * (2 * BS * D + B * S * S + 2 * BS * D
                          + D * FUSED_W + FUSED_W + 6 * D
                          + D * HIDDEN + HIDDEN + HIDDEN * D)

    out = pl.pallas_call(
        encoder_layer_kernel,
        out_shape=jax.ShapeDtypeStruct((BS, D), jnp.float32),
        grid_spec=grid_spec,
        compiler_params=pltpu.CompilerParams(dimension_semantics=("arbitrary",)),
        cost_estimate=pl.CostEstimate(flops=int(flops),
                                      transcendentals=int(transcendentals),
                                      bytes_accessed=int(bytes_accessed)),
    )(*operands)
    return out.reshape(B, S, D)


def transformer_encoder_layer(x, prepared):
    """prepared = _prepare_fused_inputs(...), computed once and reused per call."""
    return _encoder_layer_call(x, *prepared)


# ---------------- parameter / table construction (plain JAX glue) ----------------
def init_params(key):
    def lin(k, fan_in, fan_out):
        bound = 1.0 / math.sqrt(fan_in)
        kw, kb = jax.random.split(k)
        w = jax.random.uniform(kw, (fan_in, fan_out), jnp.float32, -bound, bound)
        b = jax.random.uniform(kb, (1, fan_out), jnp.float32, -bound, bound)
        return w, b

    ks = jax.random.split(key, 6)
    wq, bq = lin(ks[0], D, D)
    wk, bk = lin(ks[1], D, D)
    wv, bv = lin(ks[2], D, D)
    wo, bo = lin(ks[3], D, D)
    w1, fb1 = lin(ks[4], D, HIDDEN)
    w2, fb2 = lin(ks[5], HIDDEN, D)
    return dict(
        wq=wq, bq=bq, wk=wk, bk=bk, wv=wv, bv=bv, wo=wo, bo=bo,
        w1=w1, fb1=fb1, w2=w2, fb2=fb2,
        g1=jnp.ones((1, D), jnp.float32), be1=jnp.zeros((1, D), jnp.float32),  # LN default init
        g2=jnp.ones((1, D), jnp.float32), be2=jnp.zeros((1, D), jnp.float32),
    )


def rotary_tables(seq_len):
    # RotaryEmbedding(dim=ROT_DIM), theta=10000, interleaved repeat, r=2.
    # Only the first ROT_DIM dims of each head are rotated (cos=1/sin=0 elsewhere).
    inv_freq = 1.0 / (10000.0 ** (np.arange(0, ROT_DIM, 2, dtype=np.float32) / ROT_DIM))
    t = np.arange(seq_len, dtype=np.float32)
    ang = t[:, None] * inv_freq[None, :]                    # (S, ROT_DIM//2)
    ang = np.repeat(ang, 2, axis=-1)                        # (S, ROT_DIM) interleaved
    cos_h = np.concatenate([np.cos(ang), np.ones((seq_len, HEAD_DIM - ROT_DIM), np.float32)], -1)
    sin_h = np.concatenate([np.sin(ang), np.zeros((seq_len, HEAD_DIM - ROT_DIM), np.float32)], -1)
    cos = np.tile(cos_h, (1, NUM_HEADS)).astype(np.float32)  # (S, D)
    sin = np.tile(sin_h, (1, NUM_HEADS)).astype(np.float32)  # (S, D)
    # signed pair-swap matrix: rotate_half(q) = q @ Pm  (interleaved pairs)
    pm = np.zeros((D, D), np.float32)
    for j in range(D):
        if j % 2 == 0:
            pm[j + 1, j] = -1.0
        else:
            pm[j - 1, j] = 1.0
    return jnp.asarray(cos), jnp.asarray(sin), jnp.asarray(pm)


# ---------------- pure-JAX reference (mirrors the PyTorch forward, unfused) ----------------
def reference(x, mask, p, cos, sin, pm):
    def ln(t, g, b):
        mu = t.mean(-1, keepdims=True)
        var = ((t - mu) ** 2).mean(-1, keepdims=True)
        return (t - mu) / jnp.sqrt(var + EPS) * g + b

    res = x
    xn = ln(x, p["g1"], p["be1"])
    q = xn @ p["wq"] + p["bq"]
    k = xn @ p["wk"] + p["bk"]
    v = xn @ p["wv"] + p["bv"]
    q = q * cos + (q @ pm) * sin
    k = k * cos + (k @ pm) * sin
    heads = lambda t: t.reshape(B, S, NUM_HEADS, HEAD_DIM).transpose(0, 2, 1, 3)
    qh, kh, vh = heads(q), heads(k), heads(v)
    s = (qh @ kh.transpose(0, 1, 3, 2)) / math.sqrt(HEAD_DIM)
    s = jnp.where(mask[:, None, :, :] == 0, -1e9, s)
    s = jax.nn.softmax(s, axis=-1)
    o = (s @ vh).transpose(0, 2, 1, 3).reshape(B, S, D)
    x1 = res + (o @ p["wo"] + p["bo"])
    xn2 = ln(x1, p["g2"], p["be2"])
    h = xn2 @ p["w1"] + p["fb1"]
    h = _gelu_exact(h)
    y = h @ p["w2"] + p["fb2"]
    return x1 + y


if __name__ == "__main__":
    key = jax.random.PRNGKey(0)
    kx, kp = jax.random.split(key)
    x = jax.random.normal(kx, (B, S, D), jnp.float32)
    mask = jnp.broadcast_to(jnp.tril(jnp.ones((S, S), jnp.int32)), (B, S, S))  # causal mask
    params = init_params(kp)
    cos, sin, pm = rotary_tables(S)

    # One-time prep (fused weights / tables / additive mask), reused across calls.
    prepared = _prepare_fused_inputs(params, mask, cos, sin, pm)

    out = jax.block_until_ready(transformer_encoder_layer(x, prepared))
    # second call exercises the cached jit + hoisted-prep fast path
    out = jax.block_until_ready(transformer_encoder_layer(x, prepared))
    ref = jax.block_until_ready(reference(x, mask, params, cos, sin, pm))

    assert out.shape == (B, S, D)
    np.testing.assert_allclose(np.asarray(out), np.asarray(ref), rtol=2e-4, atol=2e-4)
    print("KERNEL_OK")
</pallas_src>

<mosaic_0001>
module attributes {stable_mosaic.version = 11 : i64} {
  func.func @encoder_layer_kernel(%arg0: i32, %arg1: memref<32x64xf32, #tpu.memory_space<vmem>>, %arg2: memref<2x16x16xf32, #tpu.memory_space<vmem>>, %arg3: memref<2x32x64xf32, #tpu.memory_space<vmem>>, %arg4: memref<64x768xf32, #tpu.memory_space<vmem>>, %arg5: memref<1x768xf32, #tpu.memory_space<vmem>>, %arg6: memref<6x64xf32, #tpu.memory_space<vmem>>, %arg7: memref<64x128xf32, #tpu.memory_space<vmem>>, %arg8: memref<1x128xf32, #tpu.memory_space<vmem>>, %arg9: memref<128x64xf32, #tpu.memory_space<vmem>>, %arg10: memref<32x64xf32, #tpu.memory_space<vmem>>) attributes {dimension_semantics = [#tpu.dimension_semantics<arbitrary>], iteration_bounds = array<i64: 1>, scalar_prefetch = 0 : i64, scratch_operands = 0 : i64, tpu.core_type = #tpu.core_type<tc>, window_params = [{pipeline_mode = #tpu.pipeline_mode<synchronous>, transform_indices = @transform_0, window_bounds = array<i64: 32, 64>}, {pipeline_mode = #tpu.pipeline_mode<synchronous>, transform_indices = @transform_1, window_bounds = array<i64: 2, 16, 16>}, {pipeline_mode = #tpu.pipeline_mode<synchronous>, transform_indices = @transform_2, window_bounds = array<i64: 2, 32, 64>}, {pipeline_mode = #tpu.pipeline_mode<synchronous>, transform_indices = @transform_3, window_bounds = array<i64: 64, 768>}, {pipeline_mode = #tpu.pipeline_mode<synchronous>, transform_indices = @transform_4, window_bounds = array<i64: 1, 768>}, {pipeline_mode = #tpu.pipeline_mode<synchronous>, transform_indices = @transform_5, window_bounds = array<i64: 6, 64>}, {pipeline_mode = #tpu.pipeline_mode<synchronous>, transform_indices = @transform_6, window_bounds = array<i64: 64, 128>}, {pipeline_mode = #tpu.pipeline_mode<synchronous>, transform_indices = @transform_7, window_bounds = array<i64: 1, 128>}, {pipeline_mode = #tpu.pipeline_mode<synchronous>, transform_indices = @transform_8, window_bounds = array<i64: 128, 64>}, {pipeline_mode = #tpu.pipeline_mode<synchronous>, transform_indices = @transform_9, window_bounds = array<i64: 32, 64>}]} {
    %c0 = arith.constant 0 : index
    %c0_0 = arith.constant 0 : index
    %0 = vector.load %arg1[%c0, %c0_0] : memref<32x64xf32, #tpu.memory_space<vmem>>, vector<32x64xf32>
    %c0_1 = arith.constant 0 : index
    %c0_2 = arith.constant 0 : index
    %c0_3 = arith.constant 0 : index
    %1 = vector.load %arg2[%c0_1, %c0_2, %c0_3] : memref<2x16x16xf32, #tpu.memory_space<vmem>>, vector<2x16x16xf32>
    %c0_4 = arith.constant 0 : index
    %c0_5 = arith.constant 0 : index
    %c0_6 = arith.constant 0 : index
    %2 = vector.load %arg3[%c0_4, %c0_5, %c0_6] : memref<2x32x64xf32, #tpu.memory_space<vmem>>, vector<1x32x64xf32>
    %3 = vector.shape_cast %2 : vector<1x32x64xf32> to vector<32x64xf32>
    %c1 = arith.constant 1 : index
    %c0_7 = arith.constant 0 : index
    %c0_8 = arith.constant 0 : index
    %4 = vector.load %arg3[%c1, %c0_7, %c0_8] : memref<2x32x64xf32, #tpu.memory_space<vmem>>, vector<1x32x64xf32>
    %5 = vector.shape_cast %4 : vector<1x32x64xf32> to vector<32x64xf32>
    %c0_9 = arith.constant 0 : index
    %c0_10 = arith.constant 0 : index
    %6 = vector.load %arg6[%c0_9, %c0_10] : memref<6x64xf32, #tpu.memory_space<vmem>>, vector<6x64xf32>
    %7 = vector.extract_strided_slice %6 {offsets = [0, 0], sizes = [1, 64], strides = [1, 1]} : vector<6x64xf32> to vector<1x64xf32>
    %8 = vector.extract_strided_slice %6 {offsets = [1, 0], sizes = [1, 64], strides = [1, 1]} : vector<6x64xf32> to vector<1x64xf32>
    %9 = vector.extract_strided_slice %6 {offsets = [2, 0], sizes = [1, 64], strides = [1, 1]} : vector<6x64xf32> to vector<1x64xf32>
    %10 = vector.extract_strided_slice %6 {offsets = [3, 0], sizes = [1, 64], strides = [1, 1]} : vector<6x64xf32> to vector<1x64xf32>
    %11 = vector.extract_strided_slice %6 {offsets = [4, 0], sizes = [1, 64], strides = [1, 1]} : vector<6x64xf32> to vector<1x64xf32>
    %12 = vector.extract_strided_slice %6 {offsets = [5, 0], sizes = [1, 64], strides = [1, 1]} : vector<6x64xf32> to vector<1x64xf32>
    %cst = arith.constant dense<0.000000e+00> : vector<32xf32>
    %13 = vector.multi_reduction <add>, %0, %cst [1] : vector<32x64xf32> to vector<32xf32>
    %14 = vector.shape_cast %13 : vector<32xf32> to vector<32x1xf32>
    %cst_11 = arith.constant 6.400000e+01 : f32
    %15 = vector.broadcast %cst_11 : f32 to vector<32x1xf32>
    %16 = arith.divf %14, %15 : vector<32x1xf32>
    %17 = arith.mulf %0, %0 : vector<32x64xf32>
    %cst_12 = arith.constant dense<0.000000e+00> : vector<32xf32>
    %18 = vector.multi_reduction <add>, %17, %cst_12 [1] : vector<32x64xf32> to vector<32xf32>
    %19 = vector.shape_cast %18 : vector<32xf32> to vector<32x1xf32>
    %cst_13 = arith.constant 6.400000e+01 : f32
    %20 = vector.broadcast %cst_13 : f32 to vector<32x1xf32>
    %21 = arith.divf %19, %20 : vector<32x1xf32>
    %22 = arith.mulf %16, %16 : vector<32x1xf32>
    %23 = arith.subf %21, %22 : vector<32x1xf32>
    %24 = vector.broadcast %16 : vector<32x1xf32> to vector<32x64xf32>
    %25 = arith.subf %0, %24 : vector<32x64xf32>
    %cst_14 = arith.constant 9.99999974E-6 : f32
    %26 = vector.broadcast %cst_14 : f32 to vector<32x1xf32>
    %27 = arith.addf %23, %26 : vector<32x1xf32>
    %28 = math.rsqrt %27 : vector<32x1xf32>
    %29 = vector.broadcast %28 : vector<32x1xf32> to vector<32x64xf32>
    %30 = arith.mulf %25, %29 : vector<32x64xf32>
    %31 = vector.broadcast %7 : vector<1x64xf32> to vector<32x64xf32>
    %32 = arith.mulf %30, %31 : vector<32x64xf32>
    %33 = vector.broadcast %8 : vector<1x64xf32> to vector<32x64xf32>
    %34 = arith.addf %32, %33 : vector<32x64xf32>
    %c0_15 = arith.constant 0 : index
    %c0_16 = arith.constant 0 : index
    %35 = vector.load %arg4[%c0_15, %c0_16] : memref<64x768xf32, #tpu.memory_space<vmem>>, vector<64x768xf32>
    %cst_17 = arith.constant dense<0.000000e+00> : vector<32x768xf32>
    %36 = tpu.matmul %34, %35, %cst_17 {dimension_numbers = #tpu.dot_dimension_numbers<[1], [0], [0], [1], [0, 0, 1, 1], [], []>} : vector<32x64xf32>, vector<64x768xf32>, vector<32x768xf32> -> vector<32x768xf32>
    %c0_18 = arith.constant 0 : index
    %c0_19 = arith.constant 0 : index
    %37 = vector.load %arg5[%c0_18, %c0_19] : memref<1x768xf32, #tpu.memory_space<vmem>>, vector<1x768xf32>
    %38 = vector.broadcast %37 : vector<1x768xf32> to vector<32x768xf32>
    %39 = arith.addf %36, %38 : vector<32x768xf32>
    %40 = vector.extract_strided_slice %39 {offsets = [0, 0], sizes = [32, 64], strides = [1, 1]} : vector<32x768xf32> to vector<32x64xf32>
    %41 = arith.mulf %40, %3 : vector<32x64xf32>
    %42 = vector.extract_strided_slice %39 {offsets = [0, 64], sizes = [32, 64], strides = [1, 1]} : vector<32x768xf32> to vector<32x64xf32>
    %43 = arith.mulf %42, %5 : vector<32x64xf32>
    %44 = arith.addf %41, %43 : vector<32x64xf32>
    %45 = vector.extract_strided_slice %39 {offsets = [0, 128], sizes = [32, 64], strides = [1, 1]} : vector<32x768xf32> to vector<32x64xf32>
    %46 = arith.mulf %45, %3 : vector<32x64xf32>
    %47 = vector.extract_strided_slice %39 {offsets = [0, 192], sizes = [32, 64], strides = [1, 1]} : vector<32x768xf32> to vector<32x64xf32>
    %48 = arith.mulf %47, %5 : vector<32x64xf32>
    %49 = arith.addf %46, %48 : vector<32x64xf32>
    %50 = vector.extract_strided_slice %39 {offsets = [0, 256], sizes = [32, 512], strides = [1, 1]} : vector<32x768xf32> to vector<32x512xf32>
    %51 = vector.shape_cast %44 : vector<32x64xf32> to vector<2x16x64xf32>
    %52 = vector.shape_cast %49 : vector<32x64xf32> to vector<2x16x64xf32>
    %53 = vector.shape_cast %50 : vector<32x512xf32> to vector<2x16x512xf32>
    %54 = vector.extract_strided_slice %51 {offsets = [0, 0, 0], sizes = [2, 16, 8], strides = [1, 1, 1]} : vector<2x16x64xf32> to vector<2x16x8xf32>
    %55 = vector.extract_strided_slice %52 {offsets = [0, 0, 0], sizes = [2, 16, 8], strides = [1, 1, 1]} : vector<2x16x64xf32> to vector<2x16x8xf32>
    %56 = vector.extract_strided_slice %53 {offsets = [0, 0, 0], sizes = [2, 16, 64], strides = [1, 1, 1]} : vector<2x16x512xf32> to vector<2x16x64xf32>
    "tpu.trace_start"() <{level = 10 : i32, message = "bqd,bkd->bqk"}> : () -> ()
    %cst_20 = arith.constant dense<0.000000e+00> : vector<2x16x16xf32>
    %57 = tpu.matmul %54, %55, %cst_20 {dimension_numbers = #tpu.dot_dimension_numbers<[2], [2], [1], [1], [0, 0, 0, 1, 1, 1], [0], [0]>} : vector<2x16x8xf32>, vector<2x16x8xf32>, vector<2x16x16xf32> -> vector<2x16x16xf32>
    "tpu.trace_stop"() : () -> ()
    %58 = arith.addf %57, %1 : vector<2x16x16xf32>
    %cst_21 = arith.constant dense<0xFF800000> : vector<2x16xf32>
    %59 = vector.multi_reduction <maximumf>, %58, %cst_21 [2] : vector<2x16x16xf32> to vector<2x16xf32>
    %60 = vector.shape_cast %59 : vector<2x16xf32> to vector<2x16x1xf32>
    %61 = vector.broadcast %60 : vector<2x16x1xf32> to vector<2x16x16xf32>
    %62 = arith.subf %58, %61 : vector<2x16x16xf32>
    %63 = math.exp %62 : vector<2x16x16xf32>
    %cst_22 = arith.constant dense<0.000000e+00> : vector<2x16xf32>
    %64 = vector.multi_reduction <add>, %63, %cst_22 [2] : vector<2x16x16xf32> to vector<2x16xf32>
    %65 = vector.shape_cast %64 : vector<2x16xf32> to vector<2x16x1xf32>
    %66 = tpu.reciprocal %65 : vector<2x16x1xf32> -> vector<2x16x1xf32>
    %67 = vector.broadcast %66 : vector<2x16x1xf32> to vector<2x16x16xf32>
    %68 = arith.mulf %63, %67 : vector<2x16x16xf32>
    "tpu.trace_start"() <{level = 10 : i32, message = "bqk,bkd->bqd"}> : () -> ()
    %cst_23 = arith.constant dense<0.000000e+00> : vector<2x16x64xf32>
    %69 = tpu.matmul %68, %56, %cst_23 {dimension_numbers = #tpu.dot_dimension_numbers<[2], [1], [1], [2], [0, 0, 0, 1, 1, 2], [0], [0]>} : vector<2x16x16xf32>, vector<2x16x64xf32>, vector<2x16x64xf32> -> vector<2x16x64xf32>
    "tpu.trace_stop"() : () -> ()
    %70 = vector.extract_strided_slice %51 {offsets = [0, 0, 8], sizes = [2, 16, 8], strides = [1, 1, 1]} : vector<2x16x64xf32> to vector<2x16x8xf32>
    %71 = vector.extract_strided_slice %52 {offsets = [0, 0, 8], sizes = [2, 16, 8], strides = [1, 1, 1]} : vector<2x16x64xf32> to vector<2x16x8xf32>
    %72 = vector.extract_strided_slice %53 {offsets = [0, 0, 64], sizes = [2, 16, 64], strides = [1, 1, 1]} : vector<2x16x512xf32> to vector<2x16x64xf32>
    "tpu.trace_start"() <{level = 10 : i32, message = "bqd,bkd->bqk"}> : () -> ()
    %cst_24 = arith.constant dense<0.000000e+00> : vector<2x16x16xf32>
    %73 = tpu.matmul %70, %71, %cst_24 {dimension_numbers = #tpu.dot_dimension_numbers<[2], [2], [1], [1], [0, 0, 0, 1, 1, 1], [0], [0]>} : vector<2x16x8xf32>, vector<2x16x8xf32>, vector<2x16x16xf32> -> vector<2x16x16xf32>
    "tpu.trace_stop"() : () -> ()
    %74 = arith.addf %73, %1 : vector<2x16x16xf32>
    %cst_25 = arith.constant dense<0xFF800000> : vector<2x16xf32>
    %75 = vector.multi_reduction <maximumf>, %74, %cst_25 [2] : vector<2x16x16xf32> to vector<2x16xf32>
    %76 = vector.shape_cast %75 : vector<2x16xf32> to vector<2x16x1xf32>
    %77 = vector.broadcast %76 : vector<2x16x1xf32> to vector<2x16x16xf32>
    %78 = arith.subf %74, %77 : vector<2x16x16xf32>
    %79 = math.exp %78 : vector<2x16x16xf32>
    %cst_26 = arith.constant dense<0.000000e+00> : vector<2x16xf32>
    %80 = vector.multi_reduction <add>, %79, %cst_26 [2] : vector<2x16x16xf32> to vector<2x16xf32>
    %81 = vector.shape_cast %80 : vector<2x16xf32> to vector<2x16x1xf32>
    %82 = tpu.reciprocal %81 : vector<2x16x1xf32> -> vector<2x16x1xf32>
    %83 = vector.broadcast %82 : vector<2x16x1xf32> to vector<2x16x16xf32>
    %84 = arith.mulf %79, %83 : vector<2x16x16xf32>
    "tpu.trace_start"() <{level = 10 : i32, message = "bqk,bkd->bqd"}> : () -> ()
    %cst_27 = arith.constant dense<0.000000e+00> : vector<2x16x64xf32>
    %85 = tpu.matmul %84, %72, %cst_27 {dimension_numbers = #tpu.dot_dimension_numbers<[2], [1], [1], [2], [0, 0, 0, 1, 1, 2], [0], [0]>} : vector<2x16x16xf32>, vector<2x16x64xf32>, vector<2x16x64xf32> -> vector<2x16x64xf32>
    "tpu.trace_stop"() : () -> ()
    %86 = arith.addf %69, %85 : vector<2x16x64xf32>
    %87 = vector.extract_strided_slice %51 {offsets = [0, 0, 16], sizes = [2, 16, 8], strides = [1, 1, 1]} : vector<2x16x64xf32> to vector<2x16x8xf32>
    %88 = vector.extract_strided_slice %52 {offsets = [0, 0, 16], sizes = [2, 16, 8], strides = [1, 1, 1]} : vector<2x16x64xf32> to vector<2x16x8xf32>
    %89 = vector.extract_strided_slice %53 {offsets = [0, 0, 128], sizes = [2, 16, 64], strides = [1, 1, 1]} : vector<2x16x512xf32> to vector<2x16x64xf32>
    "tpu.trace_start"() <{level = 10 : i32, message = "bqd,bkd->bqk"}> : () -> ()
    %cst_28 = arith.constant dense<0.000000e+00> : vector<2x16x16xf32>
    %90 = tpu.matmul %87, %88, %cst_28 {dimension_numbers = #tpu.dot_dimension_numbers<[2], [2], [1], [1], [0, 0, 0, 1, 1, 1], [0], [0]>} : vector<2x16x8xf32>, vector<2x16x8xf32>, vector<2x16x16xf32> -> vector<2x16x16xf32>
    "tpu.trace_stop"() : () -> ()
    %91 = arith.addf %90, %1 : vector<2x16x16xf32>
    %cst_29 = arith.constant dense<0xFF800000> : vector<2x16xf32>
    %92 = vector.multi_reduction <maximumf>, %91, %cst_29 [2] : vector<2x16x16xf32> to vector<2x16xf32>
    %93 = vector.shape_cast %92 : vector<2x16xf32> to vector<2x16x1xf32>
    %94 = vector.broadcast %93 : vector<2x16x1xf32> to vector<2x16x16xf32>
    %95 = arith.subf %91, %94 : vector<2x16x16xf32>
    %96 = math.exp %95 : vector<2x16x16xf32>
    %cst_30 = arith.constant dense<0.000000e+00> : vector<2x16xf32>
    %97 = vector.multi_reduction <add>, %96, %cst_30 [2] : vector<2x16x16xf32> to vector<2x16xf32>
    %98 = vector.shape_cast %97 : vector<2x16xf32> to vector<2x16x1xf32>
    %99 = tpu.reciprocal %98 : vector<2x16x1xf32> -> vector<2x16x1xf32>
    %100 = vector.broadcast %99 : vector<2x16x1xf32> to vector<2x16x16xf32>
    %101 = arith.mulf %96, %100 : vector<2x16x16xf32>
    "tpu.trace_start"() <{level = 10 : i32, message = "bqk,bkd->bqd"}> : () -> ()
    %cst_31 = arith.constant dense<0.000000e+00> : vector<2x16x64xf32>
    %102 = tpu.matmul %101, %89, %cst_31 {dimension_numbers = #tpu.dot_dimension_numbers<[2], [1], [1], [2], [0, 0, 0, 1, 1, 2], [0], [0]>} : vector<2x16x16xf32>, vector<2x16x64xf32>, vector<2x16x64xf32> -> vector<2x16x64xf32>
    "tpu.trace_stop"() : () -> ()
    %103 = arith.addf %86, %102 : vector<2x16x64xf32>
    %104 = vector.extract_strided_slice %51 {offsets = [0, 0, 24], sizes = [2, 16, 8], strides = [1, 1, 1]} : vector<2x16x64xf32> to vector<2x16x8xf32>
    %105 = vector.extract_strided_slice %52 {offsets = [0, 0, 24], sizes = [2, 16, 8], strides = [1, 1, 1]} : vector<2x16x64xf32> to vector<2x16x8xf32>
    %106 = vector.extract_strided_slice %53 {offsets = [0, 0, 192], sizes = [2, 16, 64], strides = [1, 1, 1]} : vector<2x16x512xf32> to vector<2x16x64xf32>
    "tpu.trace_start"() <{level = 10 : i32, message = "bqd,bkd->bqk"}> : () -> ()
    %cst_32 = arith.constant dense<0.000000e+00> : vector<2x16x16xf32>
    %107 = tpu.matmul %104, %105, %cst_32 {dimension_numbers = #tpu.dot_dimension_numbers<[2], [2], [1], [1], [0, 0, 0, 1, 1, 1], [0], [0]>} : vector<2x16x8xf32>, vector<2x16x8xf32>, vector<2x16x16xf32> -> vector<2x16x16xf32>
    "tpu.trace_stop"() : () -> ()
    %108 = arith.addf %107, %1 : vector<2x16x16xf32>
    %cst_33 = arith.constant dense<0xFF800000> : vector<2x16xf32>
    %109 = vector.multi_reduction <maximumf>, %108, %cst_33 [2] : vector<2x16x16xf32> to vector<2x16xf32>
    %110 = vector.shape_cast %109 : vector<2x16xf32> to vector<2x16x1xf32>
    %111 = vector.broadcast %110 : vector<2x16x1xf32> to vector<2x16x16xf32>
    %112 = arith.subf %108, %111 : vector<2x16x16xf32>
    %113 = math.exp %112 : vector<2x16x16xf32>
    %cst_34 = arith.constant dense<0.000000e+00> : vector<2x16xf32>
    %114 = vector.multi_reduction <add>, %113, %cst_34 [2] : vector<2x16x16xf32> to vector<2x16xf32>
    %115 = vector.shape_cast %114 : vector<2x16xf32> to vector<2x16x1xf32>
    %116 = tpu.reciprocal %115 : vector<2x16x1xf32> -> vector<2x16x1xf32>
    %117 = vector.broadcast %116 : vector<2x16x1xf32> to vector<2x16x16xf32>
    %118 = arith.mulf %113, %117 : vector<2x16x16xf32>
    "tpu.trace_start"() <{level = 10 : i32, message = "bqk,bkd->bqd"}> : () -> ()
    %cst_35 = arith.constant dense<0.000000e+00> : vector<2x16x64xf32>
    %119 = tpu.matmul %118, %106, %cst_35 {dimension_numbers = #tpu.dot_dimension_numbers<[2], [1], [1], [2], [0, 0, 0, 1, 1, 2], [0], [0]>} : vector<2x16x16xf32>, vector<2x16x64xf32>, vector<2x16x64xf32> -> vector<2x16x64xf32>
    "tpu.trace_stop"() : () -> ()
    %120 = arith.addf %103, %119 : vector<2x16x64xf32>
    %121 = vector.extract_strided_slice %51 {offsets = [0, 0, 32], sizes = [2, 16, 8], strides = [1, 1, 1]} : vector<2x16x64xf32> to vector<2x16x8xf32>
    %122 = vector.extract_strided_slice %52 {offsets = [0, 0, 32], sizes = [2, 16, 8], strides = [1, 1, 1]} : vector<2x16x64xf32> to vector<2x16x8xf32>
    %123 = vector.extract_strided_slice %53 {offsets = [0, 0, 256], sizes = [2, 16, 64], strides = [1, 1, 1]} : vector<2x16x512xf32> to vector<2x16x64xf32>
    "tpu.trace_start"() <{level = 10 : i32, message = "bqd,bkd->bqk"}> : () -> ()
    %cst_36 = arith.constant dense<0.000000e+00> : vector<2x16x16xf32>
    %124 = tpu.matmul %121, %122, %cst_36 {dimension_numbers = #tpu.dot_dimension_numbers<[2], [2], [1], [1], [0, 0, 0, 1, 1, 1], [0], [0]>} : vector<2x16x8xf32>, vector<2x16x8xf32>, vector<2x16x16xf32> -> vector<2x16x16xf32>
    "tpu.trace_stop"() : () -> ()
    %125 = arith.addf %124, %1 : vector<2x16x16xf32>
    %cst_37 = arith.constant dense<0xFF800000> : vector<2x16xf32>
    %126 = vector.multi_reduction <maximumf>, %125, %cst_37 [2] : vector<2x16x16xf32> to vector<2x16xf32>
    %127 = vector.shape_cast %126 : vector<2x16xf32> to vector<2x16x1xf32>
    %128 = vector.broadcast %127 : vector<2x16x1xf32> to vector<2x16x16xf32>
    %129 = arith.subf %125, %128 : vector<2x16x16xf32>
    %130 = math.exp %129 : vector<2x16x16xf32>
    %cst_38 = arith.constant dense<0.000000e+00> : vector<2x16xf32>
    %131 = vector.multi_reduction <add>, %130, %cst_38 [2] : vector<2x16x16xf32> to vector<2x16xf32>
    %132 = vector.shape_cast %131 : vector<2x16xf32> to vector<2x16x1xf32>
    %133 = tpu.reciprocal %132 : vector<2x16x1xf32> -> vector<2x16x1xf32>
    %134 = vector.broadcast %133 : vector<2x16x1xf32> to vector<2x16x16xf32>
    %135 = arith.mulf %130, %134 : vector<2x16x16xf32>
    "tpu.trace_start"() <{level = 10 : i32, message = "bqk,bkd->bqd"}> : () -> ()
    %cst_39 = arith.constant dense<0.000000e+00> : vector<2x16x64xf32>
    %136 = tpu.matmul %135, %123, %cst_39 {dimension_numbers = #tpu.dot_dimension_numbers<[2], [1], [1], [2], [0, 0, 0, 1, 1, 2], [0], [0]>} : vector<2x16x16xf32>, vector<2x16x64xf32>, vector<2x16x64xf32> -> vector<2x16x64xf32>
    "tpu.trace_stop"() : () -> ()
    %137 = arith.addf %120, %136 : vector<2x16x64xf32>
    %138 = vector.extract_strided_slice %51 {offsets = [0, 0, 40], sizes = [2, 16, 8], strides = [1, 1, 1]} : vector<2x16x64xf32> to vector<2x16x8xf32>
    %139 = vector.extract_strided_slice %52 {offsets = [0, 0, 40], sizes = [2, 16, 8], strides = [1, 1, 1]} : vector<2x16x64xf32> to vector<2x16x8xf32>
    %140 = vector.extract_strided_slice %53 {offsets = [0, 0, 320], sizes = [2, 16, 64], strides = [1, 1, 1]} : vector<2x16x512xf32> to vector<2x16x64xf32>
    "tpu.trace_start"() <{level = 10 : i32, message = "bqd,bkd->bqk"}> : () -> ()
    %cst_40 = arith.constant dense<0.000000e+00> : vector<2x16x16xf32>
    %141 = tpu.matmul %138, %139, %cst_40 {dimension_numbers = #tpu.dot_dimension_numbers<[2], [2], [1], [1], [0, 0, 0, 1, 1, 1], [0], [0]>} : vector<2x16x8xf32>, vector<2x16x8xf32>, vector<2x16x16xf32> -> vector<2x16x16xf32>
    "tpu.trace_stop"() : () -> ()
    %142 = arith.addf %141, %1 : vector<2x16x16xf32>
    %cst_41 = arith.constant dense<0xFF800000> : vector<2x16xf32>
    %143 = vector.multi_reduction <maximumf>, %142, %cst_41 [2] : vector<2x16x16xf32> to vector<2x16xf32>
    %144 = vector.shape_cast %143 : vector<2x16xf32> to vector<2x16x1xf32>
    %145 = vector.broadcast %144 : vector<2x16x1xf32> to vector<2x16x16xf32>
    %146 = arith.subf %142, %145 : vector<2x16x16xf32>
    %147 = math.exp %146 : vector<2x16x16xf32>
    %cst_42 = arith.constant dense<0.000000e+00> : vector<2x16xf32>
    %148 = vector.multi_reduction <add>, %147, %cst_42 [2] : vector<2x16x16xf32> to vector<2x16xf32>
    %149 = vector.shape_cast %148 : vector<2x16xf32> to vector<2x16x1xf32>
    %150 = tpu.reciprocal %149 : vector<2x16x1xf32> -> vector<2x16x1xf32>
    %151 = vector.broadcast %150 : vector<2x16x1xf32> to vector<2x16x16xf32>
    %152 = arith.mulf %147, %151 : vector<2x16x16xf32>
    "tpu.trace_start"() <{level = 10 : i32, message = "bqk,bkd->bqd"}> : () -> ()
    %cst_43 = arith.constant dense<0.000000e+00> : vector<2x16x64xf32>
    %153 = tpu.matmul %152, %140, %cst_43 {dimension_numbers = #tpu.dot_dimension_numbers<[2], [1], [1], [2], [0, 0, 0, 1, 1, 2], [0], [0]>} : vector<2x16x16xf32>, vector<2x16x64xf32>, vector<2x16x64xf32> -> vector<2x16x64xf32>
    "tpu.trace_stop"() : () -> ()
    %154 = arith.addf %137, %153 : vector<2x16x64xf32>
    %155 = vector.extract_strided_slice %51 {offsets = [0, 0, 48], sizes = [2, 16, 8], strides = [1, 1, 1]} : vector<2x16x64xf32> to vector<2x16x8xf32>
    %156 = vector.extract_strided_slice %52 {offsets = [0, 0, 48], sizes = [2, 16, 8], strides = [1, 1, 1]} : vector<2x16x64xf32> to vector<2x16x8xf32>
    %157 = vector.extract_strided_slice %53 {offsets = [0, 0, 384], sizes = [2, 16, 64], strides = [1, 1, 1]} : vector<2x16x512xf32> to vector<2x16x64xf32>
    "tpu.trace_start"() <{level = 10 : i32, message = "bqd,bkd->bqk"}> : () -> ()
    %cst_44 = arith.constant dense<0.000000e+00> : vector<2x16x16xf32>
    %158 = tpu.matmul %155, %156, %cst_44 {dimension_numbers = #tpu.dot_dimension_numbers<[2], [2], [1], [1], [0, 0, 0, 1, 1, 1], [0], [0]>} : vector<2x16x8xf32>, vector<2x16x8xf32>, vector<2x16x16xf32> -> vector<2x16x16xf32>
    "tpu.trace_stop"() : () -> ()
    %159 = arith.addf %158, %1 : vector<2x16x16xf32>
    %cst_45 = arith.constant dense<0xFF800000> : vector<2x16xf32>
    %160 = vector.multi_reduction <maximumf>, %159, %cst_45 [2] : vector<2x16x16xf32> to vector<2x16xf32>
    %161 = vector.shape_cast %160 : vector<2x16xf32> to vector<2x16x1xf32>
    %162 = vector.broadcast %161 : vector<2x16x1xf32> to vector<2x16x16xf32>
    %163 = arith.subf %159, %162 : vector<2x16x16xf32>
    %164 = math.exp %163 : vector<2x16x16xf32>
    %cst_46 = arith.constant dense<0.000000e+00> : vector<2x16xf32>
    %165 = vector.multi_reduction <add>, %164, %cst_46 [2] : vector<2x16x16xf32> to vector<2x16xf32>
    %166 = vector.shape_cast %165 : vector<2x16xf32> to vector<2x16x1xf32>
    %167 = tpu.reciprocal %166 : vector<2x16x1xf32> -> vector<2x16x1xf32>
    %168 = vector.broadcast %167 : vector<2x16x1xf32> to vector<2x16x16xf32>
    %169 = arith.mulf %164, %168 : vector<2x16x16xf32>
    "tpu.trace_start"() <{level = 10 : i32, message = "bqk,bkd->bqd"}> : () -> ()
    %cst_47 = arith.constant dense<0.000000e+00> : vector<2x16x64xf32>
    %170 = tpu.matmul %169, %157, %cst_47 {dimension_numbers = #tpu.dot_dimension_numbers<[2], [1], [1], [2], [0, 0, 0, 1, 1, 2], [0], [0]>} : vector<2x16x16xf32>, vector<2x16x64xf32>, vector<2x16x64xf32> -> vector<2x16x64xf32>
    "tpu.trace_stop"() : () -> ()
    %171 = arith.addf %154, %170 : vector<2x16x64xf32>
    %172 = vector.extract_strided_slice %51 {offsets = [0, 0, 56], sizes = [2, 16, 8], strides = [1, 1, 1]} : vector<2x16x64xf32> to vector<2x16x8xf32>
    %173 = vector.extract_strided_slice %52 {offsets = [0, 0, 56], sizes = [2, 16, 8], strides = [1, 1, 1]} : vector<2x16x64xf32> to vector<2x16x8xf32>
    %174 = vector.extract_strided_slice %53 {offsets = [0, 0, 448], sizes = [2, 16, 64], strides = [1, 1, 1]} : vector<2x16x512xf32> to vector<2x16x64xf32>
    "tpu.trace_start"() <{level = 10 : i32, message = "bqd,bkd->bqk"}> : () -> ()
    %cst_48 = arith.constant dense<0.000000e+00> : vector<2x16x16xf32>
    %175 = tpu.matmul %172, %173, %cst_48 {dimension_numbers = #tpu.dot_dimension_numbers<[2], [2], [1], [1], [0, 0, 0, 1, 1, 1], [0], [0]>} : vector<2x16x8xf32>, vector<2x16x8xf32>, vector<2x16x16xf32> -> vector<2x16x16xf32>
    "tpu.trace_stop"() : () -> ()
    %176 = arith.addf %175, %1 : vector<2x16x16xf32>
    %cst_49 = arith.constant dense<0xFF800000> : vector<2x16xf32>
    %177 = vector.multi_reduction <maximumf>, %176, %cst_49 [2] : vector<2x16x16xf32> to vector<2x16xf32>
    %178 = vector.shape_cast %177 : vector<2x16xf32> to vector<2x16x1xf32>
    %179 = vector.broadcast %178 : vector<2x16x1xf32> to vector<2x16x16xf32>
    %180 = arith.subf %176, %179 : vector<2x16x16xf32>
    %181 = math.exp %180 : vector<2x16x16xf32>
    %cst_50 = arith.constant dense<0.000000e+00> : vector<2x16xf32>
    %182 = vector.multi_reduction <add>, %181, %cst_50 [2] : vector<2x16x16xf32> to vector<2x16xf32>
    %183 = vector.shape_cast %182 : vector<2x16xf32> to vector<2x16x1xf32>
    %184 = tpu.reciprocal %183 : vector<2x16x1xf32> -> vector<2x16x1xf32>
    %185 = vector.broadcast %184 : vector<2x16x1xf32> to vector<2x16x16xf32>
    %186 = arith.mulf %181, %185 : vector<2x16x16xf32>
    "tpu.trace_start"() <{level = 10 : i32, message = "bqk,bkd->bqd"}> : () -> ()
    %cst_51 = arith.constant dense<0.000000e+00> : vector<2x16x64xf32>
    %187 = tpu.matmul %186, %174, %cst_51 {dimension_numbers = #tpu.dot_dimension_numbers<[2], [1], [1], [2], [0, 0, 0, 1, 1, 2], [0], [0]>} : vector<2x16x16xf32>, vector<2x16x64xf32>, vector<2x16x64xf32> -> vector<2x16x64xf32>
    "tpu.trace_stop"() : () -> ()
    %188 = arith.addf %171, %187 : vector<2x16x64xf32>
    %189 = vector.shape_cast %188 : vector<2x16x64xf32> to vector<32x64xf32>
    %190 = vector.broadcast %11 : vector<1x64xf32> to vector<32x64xf32>
    %191 = arith.addf %189, %190 : vector<32x64xf32>
    %192 = arith.addf %0, %191 : vector<32x64xf32>
    %cst_52 = arith.constant dense<0.000000e+00> : vector<32xf32>
    %193 = vector.multi_reduction <add>, %192, %cst_52 [1] : vector<32x64xf32> to vector<32xf32>
    %194 = vector.shape_cast %193 : vector<32xf32> to vector<32x1xf32>
    %cst_53 = arith.constant 6.400000e+01 : f32
    %195 = vector.broadcast %cst_53 : f32 to vector<32x1xf32>
    %196 = arith.divf %194, %195 : vector<32x1xf32>
    %197 = arith.mulf %192, %192 : vector<32x64xf32>
    %cst_54 = arith.constant dense<0.000000e+00> : vector<32xf32>
    %198 = vector.multi_reduction <add>, %197, %cst_54 [1] : vector<32x64xf32> to vector<32xf32>
    %199 = vector.shape_cast %198 : vector<32xf32> to vector<32x1xf32>
    %cst_55 = arith.constant 6.400000e+01 : f32
    %200 = vector.broadcast %cst_55 : f32 to vector<32x1xf32>
    %201 = arith.divf %199, %200 : vector<32x1xf32>
    %202 = arith.mulf %196, %196 : vector<32x1xf32>
    %203 = arith.subf %201, %202 : vector<32x1xf32>
    %204 = vector.broadcast %196 : vector<32x1xf32> to vector<32x64xf32>
    %205 = arith.subf %192, %204 : vector<32x64xf32>
    %cst_56 = arith.constant 9.99999974E-6 : f32
    %206 = vector.broadcast %cst_56 : f32 to vector<32x1xf32>
    %207 = arith.addf %203, %206 : vector<32x1xf32>
    %208 = math.rsqrt %207 : vector<32x1xf32>
    %209 = vector.broadcast %208 : vector<32x1xf32> to vector<32x64xf32>
    %210 = arith.mulf %205, %209 : vector<32x64xf32>
    %211 = vector.broadcast %9 : vector<1x64xf32> to vector<32x64xf32>
    %212 = arith.mulf %210, %211 : vector<32x64xf32>
    %213 = vector.broadcast %10 : vector<1x64xf32> to vector<32x64xf32>
    %214 = arith.addf %212, %213 : vector<32x64xf32>
    %c0_57 = arith.constant 0 : index
    %c0_58 = arith.constant 0 : index
    %215 = vector.load %arg7[%c0_57, %c0_58] : memref<64x128xf32, #tpu.memory_space<vmem>>, vector<64x128xf32>
    %cst_59 = arith.constant dense<0.000000e+00> : vector<32x128xf32>
    %216 = tpu.matmul %214, %215, %cst_59 {dimension_numbers = #tpu.dot_dimension_numbers<[1], [0], [0], [1], [0, 0, 1, 1], [], []>} : vector<32x64xf32>, vector<64x128xf32>, vector<32x128xf32> -> vector<32x128xf32>
    %c0_60 = arith.constant 0 : index
    %c0_61 = arith.constant 0 : index
    %217 = vector.load %arg8[%c0_60, %c0_61] : memref<1x128xf32, #tpu.memory_space<vmem>>, vector<1x128xf32>
    %218 = vector.broadcast %217 : vector<1x128xf32> to vector<32x128xf32>
    %219 = arith.addf %216, %218 : vector<32x128xf32>
    %cst_62 = arith.constant 5.000000e-01 : f32
    %220 = vector.broadcast %cst_62 : f32 to vector<32x128xf32>
    %221 = arith.mulf %220, %219 : vector<32x128xf32>
    %cst_63 = arith.constant 0.707106769 : f32
    %222 = vector.broadcast %cst_63 : f32 to vector<32x128xf32>
    %223 = arith.mulf %219, %222 : vector<32x128xf32>
    %224 = math.erf %223 : vector<32x128xf32>
    %cst_64 = arith.constant 1.000000e+00 : f32
    %225 = vector.broadcast %cst_64 : f32 to vector<32x128xf32>
    %226 = arith.addf %225, %224 : vector<32x128xf32>
    %227 = arith.mulf %221, %226 : vector<32x128xf32>
    %c0_65 = arith.constant 0 : index
    %c0_66 = arith.constant 0 : index
    %228 = vector.load %arg9[%c0_65, %c0_66] : memref<128x64xf32, #tpu.memory_space<vmem>>, vector<128x64xf32>
    %cst_67 = arith.constant dense<0.000000e+00> : vector<32x64xf32>
    %229 = tpu.matmul %227, %228, %cst_67 {dimension_numbers = #tpu.dot_dimension_numbers<[1], [0], [0], [1], [0, 0, 1, 1], [], []>} : vector<32x128xf32>, vector<128x64xf32>, vector<32x64xf32> -> vector<32x64xf32>
    %230 = vector.broadcast %12 : vector<1x64xf32> to vector<32x64xf32>
    %231 = arith.addf %229, %230 : vector<32x64xf32>
    %232 = arith.addf %192, %231 : vector<32x64xf32>
    %c0_68 = arith.constant 0 : index
    %c0_69 = arith.constant 0 : index
    %233 = vector.load %arg10[%c0_68, %c0_69] : memref<32x64xf32, #tpu.memory_space<vmem>>, vector<32x64xf32>
    tpu.vector_store %arg10[%c0_68, %c0_69], %232 {strides = array<i32>} : memref<32x64xf32, #tpu.memory_space<vmem>>, vector<32x64xf32>,
    return
  }
  func.func @transform_0(%arg0: i32) -> (i32, i32) {
    %c0_i32 = arith.constant 0 : i32
    %c0_i32_0 = arith.constant 0 : i32
    %c0_i32_1 = arith.constant 0 : i32
    return %c0_i32, %c0_i32_0 : i32, i32
  }
  func.func @transform_1(%arg0: i32) -> (i32, i32, i32) {
    %c0_i32 = arith.constant 0 : i32
    %c0_i32_0 = arith.constant 0 : i32
    %c0_i32_1 = arith.constant 0 : i32
    %c0_i32_2 = arith.constant 0 : i32
    return %c0_i32, %c0_i32_0, %c0_i32_1 : i32, i32, i32
  }
  func.func @transform_2(%arg0: i32) -> (i32, i32, i32) {
    %c0_i32 = arith.constant 0 : i32
    %c0_i32_0 = arith.constant 0 : i32
    %c0_i32_1 = arith.constant 0 : i32
    %c0_i32_2 = arith.constant 0 : i32
    return %c0_i32, %c0_i32_0, %c0_i32_1 : i32, i32, i32
  }
  func.func @transform_3(%arg0: i32) -> (i32, i32) {
    %c0_i32 = arith.constant 0 : i32
    %c0_i32_0 = arith.constant 0 : i32
    %c0_i32_1 = arith.constant 0 : i32
    return %c0_i32, %c0_i32_0 : i32, i32
  }
  func.func @transform_4(%arg0: i32) -> (i32, i32) {
    %c0_i32 = arith.constant 0 : i32
    %c0_i32_0 = arith.constant 0 : i32
    %c0_i32_1 = arith.constant 0 : i32
    return %c0_i32, %c0_i32_0 : i32, i32
  }
  func.func @transform_5(%arg0: i32) -> (i32, i32) {
    %c0_i32 = arith.constant 0 : i32
    %c0_i32_0 = arith.constant 0 : i32
    %c0_i32_1 = arith.constant 0 : i32
    return %c0_i32, %c0_i32_0 : i32, i32
  }
  func.func @transform_6(%arg0: i32) -> (i32, i32) {
    %c0_i32 = arith.constant 0 : i32
    %c0_i32_0 = arith.constant 0 : i32
    %c0_i32_1 = arith.constant 0 : i32
    return %c0_i32, %c0_i32_0 : i32, i32
  }
  func.func @transform_7(%arg0: i32) -> (i32, i32) {
    %c0_i32 = arith.constant 0 : i32
    %c0_i32_0 = arith.constant 0 : i32
    %c0_i32_1 = arith.constant 0 : i32
    return %c0_i32, %c0_i32_0 : i32, i32
  }
  func.func @transform_8(%arg0: i32) -> (i32, i32) {
    %c0_i32 = arith.constant 0 : i32
    %c0_i32_0 = arith.constant 0 : i32
    %c0_i32_1 = arith.constant 0 : i32
    return %c0_i32, %c0_i32_0 : i32, i32
  }
  func.func @transform_9(%arg0: i32) -> (i32, i32) {
    %c0_i32 = arith.constant 0 : i32
    %c0_i32_0 = arith.constant 0 : i32
    %c0_i32_1 = arith.constant 0 : i32
    return %c0_i32, %c0_i32_0 : i32, i32
  }
}

</mosaic_0001>

<bundles_post_ra>
// kernel: _encoder_layer_call.1
= control target key start
LH: loop header
LB: loop body
LE: loop exit
PB: predicated region body
PF: predicated region fallthrough
CT: control target
= control target key end

     0   :  { %14 = vsyncpa [#allocation3], 0  ;;  %s6202_s0 = inlined_call_operand.vmem [shape: f32[32,64], index: 0, kind: input, shape index: {}]   ;;  %s6203_s1 = inlined_call_operand.vmem [shape: f32[2,16,16], index: 1, kind: input, shape index: {}]   ;;  %s6204_s2 = inlined_call_operand.vmem [shape: f32[2,32,64], index: 2, kind: input, shape index: {}]   ;;  %s6205_s3 = inlined_call_operand.hbm [shape: f32[64,768], index: 3, kind: input, shape index: {}]   ;;  %s6206_s4 = inlined_call_operand.vmem [shape: f32[1,768], index: 4, kind: input, shape index: {}]   ;;  %s6207_s5 = inlined_call_operand.vmem [shape: f32[6,64], index: 5, kind: input, shape index: {}]   ;;  %s6208_s6 = inlined_call_operand.vmem [shape: f32[64,128], index: 6, kind: input, shape index: {}]   ;;  %s6209_s7 = inlined_call_operand.vmem [shape: f32[1,128], index: 7, kind: input, shape index: {}]   ;;  %s6210_s8 = inlined_call_operand.vmem [shape: f32[128,64], index: 8, kind: input, shape index: {}]   ;;  %s6211_s9 = inlined_call_operand.hbm [shape: f32[32,64], index: 9, kind: output, shape index: {}]  }
   0x1   :  { %15 = vsyncpa [#allocation4], 0  ;;  %s5289_s30 = smov [#allocation2]   ;;  %s5241_s13 = scalar_lea.hbm %s6205_s3, 6144 }
   0x2   :  { %s27_s10 = sshll.u32 %s5289_s30, 4  ;;  %p5242_p0 = scmp.ne.s32.totalorder %s6205_s3, %s5241_s13  ;;  %s28_s10 = int_to_ptr.vmem [resolvable:$true] %s27_s10 }
   0x3   :  { %p5245_p1 = scmp.lt.u32.totalorder %s5241_s13, %s6205_s3 }
   0x5   :  { %p5247_p2 = pnand %p5245_p1, %p5242_p0 }
   0x7   :  { %5250 = shalt.err (!%p5247_p2)
}
   0x8   :  { %s5251_s18 = scalar_lea.vmem %s28_s10, 6144  ;;  %p5256_p4 = scmp.lt.s32.totalorder %s28_s10, %s28_s10 }
   0x9   :  { %p5252_p3 = scmp.ne.s32.totalorder %s28_s10, %s5251_s18  ;;  %p5257_p5 = scmp.lt.s32.totalorder %s5251_s18, %s5251_s18 }
   0xb   :  { %p5258_p6 = por %p5257_p5, %p5256_p4 }
   0xd   :  { %p5259_p7 = pnand %p5258_p6, %p5252_p3 }
   0xf   :  { %5262 = shalt.err (!%p5259_p7)
}
  0x10   :  { %s5290_s19 = smov 768   ;;  %s5291_s20 = smov 48  }
  0x11   :  { %33 = dma.hbm_to_vmem [thread:$0]  %s6205_s3, 6144, %s28_s10, [#allocation3], %s5290_s19, %s5290_s19, %s5291_s20  }
  0x12   :  { %5285 = dma.done.wait [#allocation3], 6144  }
  0x13   :  { %5286 = vsyncadd [#allocation3], 4294961152  ;;  %vm65_vm0 = vcmask 523264   ;;  %v5369_v0 = vld [vmem:[%s6202_s0 + $0x8] sm:$0xff]  ;;  %v5374_v1 = vld [vmem:[%s6202_s0] sm:$0xff]  ;;  %v5292_v63 = vmov 0.0  }
  0x14   :  { %v5379_v2 = vld [vmem:[%s6202_s0 + $0x10] sm:$0xff]  ;;  %v69_v3 = vsel %vm65_vm0, %v5369_v0, 0.0  ;;  %v66_v4 = vsel %vm65_vm0, %v5374_v1, 0.0  ;;  %v84_v5 = vmul.f32 %v5369_v0, %v5369_v0  ;;  %v83_v6 = vmul.f32 %v5374_v1, %v5374_v1  ;;  %v5396_v10 = vld [vmem:[%s6202_s0 + $0x18] sm:$0xff]  ;;  %v144_v16 = vld [vmem:[#allocation2 + $0x8] sm:$0xff]  ;;  %299 = vmatprep.mubr.f32.mxu0 %v5292_v63  ;;  %388 = vmatprep.mubr.f32.mxu1 %v5292_v63  ;;  %s5293_s13 = smov 64  }
  0x15   :  { %70 = vadd.xlane.f32.xlu1 %v69_v3  ;;  %67 = vadd.xlane.f32.xlu0 %v66_v4  ;;  %v85_v9 = vmul.f32 %v5379_v2, %v5379_v2  ;;  %v72_v11 = vsel %vm65_vm0, %v5379_v2, 0.0  ;;  %v86_v13 = vmul.f32 %v5396_v10, %v5396_v10  ;;  %v75_v14 = vsel %vm65_vm0, %v5396_v10, 0.0  ;;  %v150_v17 = vld [vmem:[#allocation2 + $0x38] sm:$0xff]  ;;  %v152_v20 = vld [vmem:[#allocation2 + $0x48] sm:$0xff]  ;;  %v143_v21 = vld [vmem:[#allocation2] sm:$0xff]  ;;  %s5294_s3 = smov 120  }
  0x16   :  { %v90_v7 = vsel %vm65_vm0, %v84_v5, 0.0  ;;  %v87_v8 = vsel %vm65_vm0, %v83_v6, 0.0  ;;  %v146_v18 = vld [vmem:[#allocation2 + $0x18] sm:$0xff]  ;;  %v4671_v19 = vpack.c.bf16 %v150_v17, %v144_v16  ;;  %v149_v22 = vld [vmem:[#allocation2 + $0x30] sm:$0xff]  ;;  %v151_v26 = vld [vmem:[#allocation2 + $0x40] sm:$0xff]  ;;  %vm574_vm1 = vcmask 64512  }
  0x17   :  { %v93_v12 = vsel %vm65_vm0, %v85_v9, 0.0  ;;  %v96_v15 = vsel %vm65_vm0, %v86_v13, 0.0  ;;  %v4687_v23 = vpack.c.bf16 %v152_v20, %v146_v18  ;;  %v4673_v24 = vpack.c.bf16 %v149_v22, %v143_v21  ;;  %v145_v25 = vld [vmem:[#allocation2 + $0x10] sm:$0xff]  ;;  %v156_v28 = vld [vmem:[#allocation2 + $0x68] sm:$0xff]  ;;  %v162_v29 = vld [vmem:[#allocation2 + $0x98] sm:$0xff]  ;;  %s5295_s16 = smov 112  }
  0x18   :  { %4672 = vmatprep.subr.bf16.mxu0 %v4671_v19  ;;  %v4689_v27 = vpack.c.bf16 %v151_v26, %v145_v25  ;;  %v158_v30 = vld [vmem:[#allocation2 + $0x78] sm:$0xff]  ;;  %v4675_v31 = vpack.c.bf16 %v162_v29, %v156_v28  ;;  %v164_v32 = vld [vmem:[#allocation2 + $0xa8] sm:$0xff]  ;;  %v155_v33 = vld [vmem:[#allocation2 + $0x60] sm:$0xff]  ;;  %v127_v26 = vlaneseq  ;;  %vm749_vm3 = vcmask 130048   ;;  %s5296_s17 = smov 104   ;;  %s5297_s18 = smov 96  }
  0x19   :  { %91 = vadd.xlane.f32.xlu1 %v90_v7  ;;  %88 = vadd.xlane.f32.xlu0 %v87_v8  ;;  %v161_v34 = vld [vmem:[#allocation2 + $0x90] sm:$0xff]  ;;  %v4691_v35 = vpack.c.bf16 %v164_v32, %v158_v30  ;;  %v163_v38 = vld [vmem:[#allocation2 + $0xa0] sm:$0xff]  ;;  %v168_v40 = vld [vmem:[#allocation2 + $0xc8] sm:$0xff]  ;;  %s5298_s19 = smov 88   ;;  %s5299_s20 = smov 80  }
  0x1a   :  { %4688 = vmatprep.subr.bf16.mxu1 %v4687_v23  ;;  %4674 = vmatpush1.bf16.msra.mxu0 %v4673_v24  ;;  %v4677_v36 = vpack.c.bf16 %v161_v34, %v155_v33  ;;  %v157_v37 = vld [vmem:[#allocation2 + $0x70] sm:$0xff]  ;;  %v174_v41 = vld [vmem:[#allocation2 + $0xf8] sm:$0xff]  ;;  %v176_v44 = vld [vmem:[#allocation2 + $0x108] sm:$0xff] }
  0x1b   :  { %4690 = vmatpush1.bf16.msra.mxu1 %v4689_v27  ;;  %4676 = vmatprep.subr.bf16.mxu0 %v4675_v31  ;;  %v4693_v39 = vpack.c.bf16 %v163_v38, %v157_v37  ;;  %v170_v42 = vld [vmem:[#allocation2 + $0xd8] sm:$0xff]  ;;  %v4679_v43 = vpack.c.bf16 %v174_v41, %v168_v40  ;;  %v167_v45 = vld [vmem:[#allocation2 + $0xc0] sm:$0xff]  ;;  %v173_v46 = vld [vmem:[#allocation2 + $0xf0] sm:$0xff]  ;;  %v5424_v37 = vshrl.u32 %v127_v26, 7 }
  0x1c   :  { %4692 = vmatprep.subr.bf16.mxu1 %v4691_v35  ;;  %v4695_v47 = vpack.c.bf16 %v176_v44, %v170_v42  ;;  %v4681_v48 = vpack.c.bf16 %v173_v46, %v167_v45  ;;  %v169_v49 = vld [vmem:[#allocation2 + $0xd0] sm:$0xff]  ;;  %v175_v50 = vld [vmem:[#allocation2 + $0x100] sm:$0xff]  ;;  %v180_v52 = vld [vmem:[#allocation2 + $0x128] sm:$0xff] }
  0x1d   :  { %73 = vadd.xlane.f32.xlu0 %v72_v11  ;;  %94 = vadd.xlane.f32.xlu1 %v93_v12  ;;  %v4697_v51 = vpack.c.bf16 %v175_v50, %v169_v49  ;;  %v186_v53 = vld [vmem:[#allocation2 + $0x158] sm:$0xff]  ;;  %v188_v56 = vld [vmem:[#allocation2 + $0x168] sm:$0xff]  ;;  %v179_v57 = vld [vmem:[#allocation2 + $0x120] sm:$0xff]  ;;  %v129_v41 = vsub.s32 0, %v5424_v37  ;;  %v137_v44 = vsub.s32 1, %v5424_v37 }
  0x1e   :  { %4678 = vmatpush1.bf16.msra.mxu0 %v4677_v36  ;;  %v182_v54 = vld [vmem:[#allocation2 + $0x138] sm:$0xff]  ;;  %v4683_v55 = vpack.c.bf16 %v186_v53, %v180_v52  ;;  %v185_v58 = vld [vmem:[#allocation2 + $0x150] sm:$0xff]  ;;  %v187_v62 = vld [vmem:[#allocation2 + $0x160] sm:$0xff] }
  0x1f   :  { %4694 = vmatpush1.bf16.msra.mxu1 %v4693_v39  ;;  %4680 = vmatprep.subr.bf16.mxu0 %v4679_v43  ;;  %v4699_v59 = vpack.c.bf16 %v188_v56, %v182_v54  ;;  %v4685_v60 = vpack.c.bf16 %v185_v58, %v179_v57  ;;  %v181_v61 = vld [vmem:[#allocation2 + $0x130] sm:$0xff]  ;;  %v148_v4 = vld [vmem:[#allocation2 + $0x28] sm:$0xff]  ;;  %v154_v5 = vld [vmem:[#allocation2 + $0x58] sm:$0xff] }
  0x20   :  { %4696 = vmatprep.subr.bf16.mxu1 %v4695_v47  ;;  %v4701_v3 = vpack.c.bf16 %v187_v62, %v181_v61  ;;  %v4703_v6 = vpack.c.bf16 %v154_v5, %v148_v4  ;;  %v4110_v7 = vld [vmem:[%s6204_s2 + $0x20] sm:$0xff]  ;;  %v4111_v8 = vld [vmem:[%s6204_s2 + $0x28] sm:$0xff]  ;;  %v4112_v9 = vld [vmem:[%s6204_s2 + $0x30] sm:$0xff] }
  0x21   :  { %76 = vadd.xlane.f32.xlu0 %v75_v14  ;;  %97 = vadd.xlane.f32.xlu1 %v96_v15  ;;  %v4113_v11 = vld [vmem:[%s6204_s2 + $0x38] sm:$0xff]  ;;  %v64_v42 = vld [vmem:[%s6207_s5] sm:$0x3f]  ;;  %v153_v53 = vld [vmem:[#allocation2 + $0x50] sm:$0xff] }
  0x22   :  { %4682 = vmatpush1.bf16.msra.mxu0 %v4681_v48  ;;  %v130_v48 = vrot.slane %v64_v42, %v129_v41  ;;  %v147_v52 = vld [vmem:[#allocation2 + $0x20] sm:$0xff]  ;;  %v166_v56 = vld [vmem:[#allocation2 + $0xb8] sm:$0xff]  ;;  %v172_v5 = vld [vmem:[#allocation2 + $0xe8] sm:$0xff] }
  0x23   :  { %4698 = vmatpush1.bf16.msra.mxu1 %v4697_v51  ;;  %4684 = vmatprep.subr.bf16.mxu0 %v4683_v55  ;;  %v138_v51 = vrot.slane %v64_v42, %v137_v44  ;;  %v160_v55 = vld [vmem:[#allocation2 + $0x88] sm:$0xff]  ;;  %v159_v62 = vld [vmem:[#allocation2 + $0x80] sm:$0xff]  ;;  %vm5614_vm2 = vmpackc.low %vm574_vm1, %vm574_vm1 }
  0x24   :  { %4700 = vmatprep.subr.bf16.mxu1 %v4699_v59  ;;  %v4707_v61 = vpack.c.bf16 %v166_v56, %v160_v55 }
  0x26   :  { %4686 = vmatpush1.bf16.msra.mxu0 %v4685_v60 }
  0x27   :  { %4702 = vmatpush1.bf16.msra.mxu1 %v4701_v3  ;;  %4704 = vmatprep.subr.bf16.mxu0 %v4703_v6  ;;  %v165_v3 = vld [vmem:[#allocation2 + $0xb0] sm:$0xff]  ;;  %v178_v6 = vld [vmem:[#allocation2 + $0x118] sm:$0xff] }
  0x32   :  { %512 = vrot.lane.b32.xlu1 %v4111_v8, %s5293_s13 }
  0x36   :  { %514 = vrot.lane.b32.xlu1 %v4112_v9, %s5293_s13 }
  0x37   :  { %510 = vrot.lane.b32.xlu0 %v4110_v7, %s5293_s13 }
  0x3a   :  { %516 = vrot.lane.b32.xlu1 %v4113_v11, %s5293_s13 }
  0xa2   :  { %v71_v12 = vpop.xlane.xlu1 %70  ;;  %v68_v13 = vpop.xlane.xlu0 %67 }
  0xa3   :  { %v80_v14 = vmul.f32 0.015625, %v71_v12  ;;  %v79_v15 = vmul.f32 0.015625, %v68_v13  ;;  %v4711_v12 = vpack.c.bf16 %v178_v6, %v172_v5  ;;  %v171_v13 = vld [vmem:[#allocation2 + $0xe0] sm:$0xff] }
  0xa5   :  { %v104_v16 = vmul.f32 %v80_v14, %v80_v14  ;;  %v103_v19 = vmul.f32 %v79_v15, %v79_v15  ;;  %v112_v46 = vsub.f32 %v5369_v0, %v80_v14  ;;  %v111_v47 = vsub.f32 %v5374_v1, %v79_v15  ;;  %v177_v14 = vld [vmem:[#allocation2 + $0x110] sm:$0xff] }
  0xa6   :  { %v92_v17 = vpop.xlane.xlu1 %91  ;;  %v89_v18 = vpop.xlane.xlu0 %88  ;;  %v4705_v0 = vpack.c.bf16 %v153_v53, %v147_v52 }
  0xa7   :  { %v100_v20 = vmul.f32 0.015625, %v92_v17  ;;  %v99_v21 = vmul.f32 0.015625, %v89_v18  ;;  %v190_v17 = vld [vmem:[#allocation2 + $0x178] sm:$0xff] }
  0xa9   :  { %v108_v22 = vsub.f32 %v100_v20, %v104_v16  ;;  %v107_v23 = vsub.f32 %v99_v21, %v103_v19  ;;  %v184_v16 = vld [vmem:[#allocation2 + $0x148] sm:$0xff]  ;;  %v183_v21 = vld [vmem:[#allocation2 + $0x140] sm:$0xff] }
  0xaa   :  { %v74_v24 = vpop.xlane.xlu0 %73  ;;  %v95_v25 = vpop.xlane.xlu1 %94  ;;  %v4715_v20 = vpack.c.bf16 %v190_v17, %v184_v16 }
  0xab   :  { %v116_v27 = vadd.f32 1e-05, %v108_v22  ;;  %v115_v28 = vadd.f32 1e-05, %v107_v23  ;;  %v81_v29 = vmul.f32 0.015625, %v74_v24  ;;  %v101_v30 = vmul.f32 0.015625, %v95_v25 }
  0xac   :  { %v189_v22 = vld [vmem:[#allocation2 + $0x170] sm:$0xff]  ;;  %v5464_v25 = vld [vmem:[%s6206_s4] sm:$0x3f] }
  0xad   :  { %5080 = vrsqrt.f32 %v116_v27  ;;  %v105_v31 = vmul.f32 %v81_v29, %v81_v29  ;;  %v113_v58 = vsub.f32 %v5379_v2, %v81_v29  ;;  %v4709_v2 = vpack.c.bf16 %v165_v3, %v159_v62 }
  0xae   :  { %5082 = vrsqrt.f32 %v115_v28  ;;  %v77_v32 = vpop.xlane.xlu0 %76  ;;  %v98_v33 = vpop.xlane.xlu1 %97  ;;  %v4717_v23 = vpack.c.bf16 %v189_v22, %v183_v21  ;;  %v196_v26 = vrot.slane %v5464_v25, %v129_v41  ;;  %v6214_v27 = vsub.s32 2, %v5424_v37 }
  0xaf   :  { %v109_v34 = vsub.f32 %v101_v30, %v105_v31  ;;  %v82_v35 = vmul.f32 0.015625, %v77_v32  ;;  %v102_v36 = vmul.f32 0.015625, %v98_v33  ;;  %v200_v29 = vrot.slane %v5464_v25, %v137_v44 }
  0xb1   :  { %v117_v38 = vadd.f32 1e-05, %v109_v34  ;;  %v106_v39 = vmul.f32 %v82_v35, %v82_v35  ;;  %v114_v7 = vsub.f32 %v5396_v10, %v82_v35  ;;  %v4713_v10 = vpack.c.bf16 %v177_v14, %v171_v13 }
  0xb2   :  { %v5470_v28 = vpop.permute.xlu1 %512  ;;  %v511_v30 = vpop.permute.xlu0 %510  ;;  %v204_v34 = vrot.slane %v5464_v25, %v6214_v27  ;;  %v6212_v14 = vsub.s32 5, %v5424_v37 }
  0xb3   :  { %5084 = vrsqrt.f32 %v117_v38  ;;  %v110_v40 = vsub.f32 %v102_v36, %v106_v39 }
  0xb5   :  { %v118_v43 = vadd.f32 1e-05, %v110_v40 }
  0xb6   :  { %v515_v40 = vpop.permute.xlu1 %514 }
  0xb7   :  { %v5081_v45 = vpop.eup %5080  ;;  %5086 = vrsqrt.f32 %v118_v43 }
  0xb8   :  { %v5083_v49 = vpop.eup %5082  ;;  %v124_v54 = vmul.f32 %v5081_v45, %v112_v46 }
  0xb9   :  { %v123_v50 = vmul.f32 %v5083_v49, %v111_v47 }
  0xba   :  { %v132_v60 = vmul.f32 %v130_v48, %v124_v54 }
  0xbb   :  { %v131_v57 = vmul.f32 %v130_v48, %v123_v50 }
  0xbc   :  { %v140_v9 = vadd.f32 %v138_v51, %v132_v60 }
  0xbd   :  { %v5085_v59 = vpop.eup %5084  ;;  %v139_v1 = vadd.f32 %v138_v51, %v131_v57 }
  0xbe   :  { %v125_v4 = vmul.f32 %v5085_v59, %v113_v58 }
  0xbf   :  { %4114 = vmatmul.mubr.msk.f32.vlgmr.msra.gmra.mrb[0].mxu0 %vm65_vm0, %v139_v1  ;;  %4118 = vmatmul.mubr.msk.f32.vlgmr.msra.gmra.mrb[0].mxu1 %vm65_vm0, %v139_v1 }
  0xc0   :  { %4706 = vmatpush1.bf16.msra.mxu0 %v4705_v0  ;;  %305 = vmatprep.mubr.f32.mxu0 %v5292_v63  ;;  %v133_v11 = vmul.f32 %v130_v48, %v125_v4 }
  0xc1   :  { %v5087_v8 = vpop.eup %5086  ;;  %394 = vmatprep.mubr.f32.mxu1 %v5292_v63  ;;  %4708 = vmatprep.subr.bf16.mxu0 %v4707_v61  ;;  %v517_v61 = vpop.permute.xlu1 %516 }
  0xc2   :  { %v126_v15 = vmul.f32 %v5087_v8, %v114_v7  ;;  %v141_v18 = vadd.f32 %v138_v51, %v133_v11 }
  0xc3   :  { %4115 = vmatmul.mubr.msk.f32.gmra.mrb[2].mxu0 %vm65_vm0, %v140_v9  ;;  %4119 = vmatmul.mubr.msk.f32.gmra.mrb[2].mxu1 %vm65_vm0, %v140_v9 }
  0xc4   :  { %4710 = vmatpush1.bf16.msra.mxu0 %v4709_v2  ;;  %311 = vmatprep.mubr.f32.mxu0 %v5292_v63  ;;  %v134_v19 = vmul.f32 %v130_v48, %v126_v15 }
  0xc5   :  { %400 = vmatprep.mubr.f32.mxu1 %v5292_v63  ;;  %4712 = vmatprep.subr.bf16.mxu0 %v4711_v12 }
  0xc6   :  { %v142_v24 = vadd.f32 %v138_v51, %v134_v19 }
  0xc7   :  { %4116 = vmatmul.mubr.msk.f32.gmra.mrb[4].mxu0 %vm65_vm0, %v141_v18  ;;  %4120 = vmatmul.mubr.msk.f32.gmra.mrb[4].mxu1 %vm65_vm0, %v141_v18 }
  0xc8   :  { %4714 = vmatpush1.bf16.msra.mxu0 %v4713_v10  ;;  %317 = vmatprep.mubr.f32.mxu0 %v5292_v63 }
  0xc9   :  { %406 = vmatprep.mubr.f32.mxu1 %v5292_v63  ;;  %4716 = vmatprep.subr.bf16.mxu0 %v4715_v20 }
  0xcb   :  { %4117 = vmatmul.mubr.msk.f32.gmra.mrb[6].mxu0 %vm65_vm0, %v142_v24  ;;  %4121 = vmatmul.mubr.msk.f32.gmra.mrb[6].mxu1 %vm65_vm0, %v142_v24 }
  0xcc   :  { %4718 = vmatpush1.bf16.msra.mxu0 %v4717_v23  ;;  %477 = vmatprep.mubr.f32.mxu0 %v5292_v63  ;;  %v216_v23 = vrot.slane %v5464_v25, %v6212_v14 }
  0xcf   :  { %4122 = vmatmul.mubr.msk.f32.vlgmr.msra.gmra.mrb[8].mxu0 %vm65_vm0, %v139_v1 }
  0xd0   :  { %483 = vmatprep.mubr.f32.mxu0 %v5292_v63 }
  0xd3   :  { %4123 = vmatmul.mubr.msk.f32.gmra.mrb[10].mxu0 %vm65_vm0, %v140_v9  ;;  %v6215_v9 = vsub.s32 4, %v5424_v37 }
  0xd4   :  { %489 = vmatprep.mubr.f32.mxu0 %v5292_v63 }
  0xd5   :  { %v212_v21 = vrot.slane %v5464_v25, %v6215_v9 }
  0xd7   :  { %4124 = vmatmul.mubr.msk.f32.gmra.mrb[12].mxu0 %vm65_vm0, %v141_v18 }
  0xd8   :  { %495 = vmatprep.mubr.f32.mxu0 %v5292_v63  ;;  %v6213_v63 = vsub.s32 3, %v5424_v37 }
  0xda   :  { %v208_v39 = vrot.slane %v5464_v25, %v6213_v63 }
  0xdb   :  { %4125 = vmatmul.mubr.msk.f32.gmra.mrb[14].mxu0 %vm65_vm0, %v142_v24 }
 0x192   :  { %v301_v31 = vpop.f32.mrb[0].mxu0  ;;  %v390_v32 = vpop.f32.mrb[0].mxu1 }
 0x193   :  { %v5476_v33 = vadd.f32 %v301_v31, %v196_v26  ;;  %v303_v35 = vpop.f32.mrb[1].mxu0  ;;  %v392_v36 = vpop.f32.mrb[1].mxu1  ;;  %v5487_v44 = vadd.f32 %v390_v32, %v204_v34 }
 0x194   :  { %v5481_v38 = vadd.f32 %v303_v35, %v200_v29  ;;  %v5493_v49 = vadd.f32 %v392_v36, %v208_v39 }
 0x195   :  { %v522_v17 = vmul.f32 %v511_v30, %v5476_v33 }
 0x196   :  { %v550_v41 = vmul.f32 %v511_v30, %v5481_v38  ;;  %v307_v42 = vpop.f32.mrb[2].mxu0  ;;  %v396_v43 = vpop.f32.mrb[2].mxu1 }
 0x197   :  { %v5489_v45 = vadd.f32 %v307_v42, %v196_v26  ;;  %v5491_v46 = vadd.f32 %v396_v43, %v204_v34  ;;  %v309_v47 = vpop.f32.mrb[3].mxu0  ;;  %v398_v48 = vpop.f32.mrb[3].mxu1 }
 0x198   :  { %v5495_v50 = vadd.f32 %v309_v47, %v200_v29  ;;  %v5497_v51 = vadd.f32 %v398_v48, %v208_v39  ;;  %558 = vrot.lane.b32.xlu0 %v550_v41, %s5293_s13 }
 0x199   :  { %v4980_v52 = vpack.i.bf16 %v5491_v46, %v5487_v44  ;;  %v5504_v53 = vpack.c.bf16 %v5491_v46, %v5487_v44  ;;  %v523_v24 = vmul.f32 %v5470_v28, %v5489_v45 }
 0x19a   :  { %v5510_v55 = vpack.c.bf16 %v5497_v51, %v5493_v49  ;;  %v551_v56 = vmul.f32 %v5470_v28, %v5495_v50  ;;  %v313_v57 = vpop.f32.mrb[4].mxu0  ;;  %v402_v58 = vpop.f32.mrb[4].mxu1 }
 0x19b   :  { %v5514_v0 = vadd.f32 %v313_v57, %v196_v26  ;;  %v315_v59 = vpop.f32.mrb[5].mxu0  ;;  %v404_v1 = vpop.f32.mrb[5].mxu1  ;;  %v5520_v5 = vadd.f32 %v402_v58, %v204_v34 }
 0x19c   :  { %v5516_v60 = vadd.f32 %v315_v59, %v200_v29  ;;  %560 = vrot.lane.b32.xlu1 %v551_v56, %s5293_s13  ;;  %v5527_v11 = vadd.f32 %v404_v1, %v208_v39 }
 0x19e   :  { %v552_v62 = vmul.f32 %v515_v40, %v5516_v60  ;;  %v319_v3 = vpop.f32.mrb[6].mxu0  ;;  %v408_v4 = vpop.f32.mrb[6].mxu1 }
 0x19f   :  { %v5522_v6 = vadd.f32 %v319_v3, %v196_v26  ;;  %v5524_v7 = vadd.f32 %v408_v4, %v204_v34  ;;  %v321_v2 = vpop.f32.mrb[7].mxu0  ;;  %v410_v8 = vpop.f32.mrb[7].mxu1  ;;  %v524_v26 = vmul.f32 %v515_v40, %v5514_v0  ;;  %v55_v3 = vld [vmem:[%s6204_s2] sm:$0xff]  ;;  %v56_v4 = vld [vmem:[%s6204_s2 + $0x8] sm:$0xff] }
 0x1a0   :  { %v5529_v12 = vadd.f32 %v321_v2, %v200_v29  ;;  %v5531_v13 = vadd.f32 %v410_v8, %v208_v39  ;;  %562 = vrot.lane.b32.xlu0 %v552_v62, %s5293_s13  ;;  %v546_v8 = vmul.f32 %v5481_v38, %v55_v3  ;;  %v58_v38 = vld [vmem:[%s6204_s2 + $0x18] sm:$0xff] }
 0x1a1   :  { %v4985_v15 = vpack.i.bf16 %v5524_v7, %v5520_v5  ;;  %v5539_v16 = vpack.c.bf16 %v5524_v7, %v5520_v5  ;;  %v525_v36 = vmul.f32 %v517_v61, %v5522_v6 }
 0x1a2   :  { %v5546_v18 = vpack.c.bf16 %v5531_v13, %v5527_v11  ;;  %v553_v19 = vmul.f32 %v517_v61, %v5529_v12  ;;  %v479_v20 = vpop.f32.mrb[8].mxu0 }
 0x1a3   :  { %v481_v22 = vpop.f32.mrb[9].mxu0  ;;  %v5560_v30 = vadd.f32 %v479_v20, %v212_v21 }
 0x1a4   :  { %564 = vrot.lane.b32.xlu1 %v553_v19, %s5293_s13  ;;  %530 = vrot.lane.b32.xlu0 %v522_v17, %s5293_s13  ;;  %v5564_v34 = vadd.f32 %v481_v22, %v216_v23  ;;  %v547_v17 = vmul.f32 %v5495_v50, %v56_v4 }
 0x1a6   :  { %v485_v29 = vpop.f32.mrb[10].mxu0 }
 0x1a7   :  { %v5562_v31 = vadd.f32 %v485_v29, %v212_v21  ;;  %v487_v32 = vpop.f32.mrb[11].mxu0  ;;  %v502_v29 = vmul.f32 %v5476_v33, %v55_v3 }
 0x1a8   :  { %v5566_v35 = vadd.f32 %v487_v32, %v216_v23  ;;  %532 = vrot.lane.b32.xlu1 %v523_v24, %s5293_s13  ;;  %534 = vrot.lane.b32.xlu0 %v524_v26, %s5293_s13  ;;  %v57_v26 = vld [vmem:[%s6204_s2 + $0x10] sm:$0xff] }
 0x1a9   :  { %v5574_v28 = vpack.c.bf16 %v5562_v31, %v5560_v30  ;;  %v548_v32 = vmul.f32 %v5516_v60, %v57_v26 }
 0x1aa   :  { %v5581_v40 = vpack.c.bf16 %v5566_v35, %v5564_v34  ;;  %v491_v41 = vpop.f32.mrb[12].mxu0 }
 0x1ab   :  { %v493_v42 = vpop.f32.mrb[13].mxu0  ;;  %v5584_v47 = vadd.f32 %v491_v41, %v212_v21 }
 0x1ac   :  { %536 = vrot.lane.b32.xlu1 %v525_v36, %s5293_s13  ;;  %v5588_v57 = vadd.f32 %v493_v42, %v216_v23  ;;  %v549_v36 = vmul.f32 %v5529_v12, %v58_v38 }
 0x1ae   :  { %v497_v43 = vpop.f32.mrb[14].mxu0 }
 0x1af   :  { %v5586_v48 = vadd.f32 %v497_v43, %v212_v21  ;;  %v499_v56 = vpop.f32.mrb[15].mxu0 }
 0x1b0   :  { %v5590_v58 = vadd.f32 %v499_v56, %v216_v23 }
 0x1b1   :  { %v5596_v1 = vpack.c.bf16 %v5586_v48, %v5584_v47 }
 0x1b2   :  { %v5602_v62 = vpack.c.bf16 %v5590_v58, %v5588_v57 }
 0x20a   :  { %v559_v2 = vpop.permute.xlu0 %558 }
 0x20b   :  { %v570_v20 = vadd.f32 %v559_v2, %v546_v8  ;;  %v503_v8 = vmul.f32 %v5489_v45, %v56_v4 }
 0x20e   :  { %v561_v19 = vpop.permute.xlu1 %560 }
 0x20f   :  { %v571_v21 = vadd.f32 %v561_v19, %v547_v17  ;;  %v504_v17 = vmul.f32 %v5514_v0, %v57_v26  ;;  %v505_v0 = vmul.f32 %v5522_v6, %v58_v38 }
 0x211   :  { %v4719_v23 = vpack.c.bf16 %v571_v21, %v570_v20  ;;  %v5618_v24 = vpack.i.bf16 %v571_v21, %v570_v20 }
 0x212   :  { %v563_v50 = vpop.permute.xlu0 %562 }
 0x213   :  { %4721 = vmatprep.subr.msk.bf16.mxu0 %vm5614_vm2, %v4719_v23  ;;  %4971 = vrot.lane.b32.xlu0 %v5618_v24, %s5294_s3  ;;  %v572_v43 = vadd.f32 %v563_v50, %v548_v32 }
 0x214   :  { %4724 = vmatpush3.bf16.xpose.msk.msra.mxu0 %vm5614_vm2, %v4719_v23 }
 0x216   :  { %v565_v41 = vpop.permute.xlu1 %564  ;;  %v531_v42 = vpop.permute.xlu0 %530 }
 0x217   :  { %v573_v56 = vadd.f32 %v565_v41, %v549_v36  ;;  %v5635_v2 = vadd.f32 %v531_v42, %v502_v29 }
 0x219   :  { %794 = vrot.lane.b32.xlu0 %v5635_v2, %s5294_s3  ;;  %4391 = vmatprep.mubr.msk.f32.mxu0 %vm574_vm1, %v5635_v2  ;;  %v5643_v33 = vpack.i.bf16 %v573_v56, %v572_v43  ;;  %v4725_v60 = vpack.c.bf16 %v573_v56, %v572_v43 }
 0x21a   :  { %v533_v12 = vpop.permute.xlu1 %532  ;;  %v535_v3 = vpop.permute.xlu0 %534 }
 0x21b   :  { %v5645_v19 = vadd.f32 %v533_v12, %v503_v8  ;;  %v5647_v20 = vadd.f32 %v535_v3, %v504_v17  ;;  %4976 = vrot.lane.b32.xlu1 %v5643_v33, %s5294_s3  ;;  %4727 = vmatprep.subr.msk.bf16.mxu1 %vm5614_vm2, %v4725_v60  ;;  %v5685_v12 = vld [vmem:[%s6203_s1 + $0x8] sm:$0xff] }
 0x21c   :  { %4730 = vmatpush3.bf16.xpose.msk.msra.mxu1 %vm5614_vm2, %v4725_v60 }
 0x21d   :  { %4392 = vmatmul.mubr.msk.f32.vlgmr.msra.gmra.mrb[16].mxu0 %vm574_vm1, %v5645_v19  ;;  %885 = vrot.lane.b32.xlu0 %v5647_v20, %s5294_s3 }
 0x21e   :  { %4398 = vmatprep.mubr.msk.f32.mxu1 %vm574_vm1, %v5647_v20  ;;  %v537_v45 = vpop.permute.xlu1 %536 }
 0x21f   :  { %796 = vrot.lane.b32.xlu1 %v5645_v19, %s5294_s3  ;;  %v5664_v4 = vadd.f32 %v537_v45, %v505_v0  ;;  %v5690_v45 = vld [vmem:[%s6203_s1] sm:$0xff] }
 0x223   :  { %887 = vrot.lane.b32.xlu1 %v5664_v4, %s5294_s3  ;;  %4399 = vmatmul.mubr.msk.f32.vlgmr.msra.gmra.mrb[8].mxu1 %vm574_vm1, %v5664_v4 }
 0x285   :  { %v4972_v21 = vpop.permute.xlu0 %4971 }
 0x286   :  { %v4974_v23 = vunpack.i.h.bf16 %v4972_v21  ;;  %v4973_v26 = vunpack.i.l.bf16 %v4972_v21 }
 0x288   :  { %v4731_v50 = vpack.c.bf16 %v4974_v23, %v4973_v26 }
 0x28a   :  { %4733 = vmatprep.subr.msk.bf16.mxu0 %vm5614_vm2, %v4731_v50 }
 0x28b   :  { %v795_v29 = vpop.permute.xlu0 %794  ;;  %4736 = vmatpush3.bf16.xpose.msk.msra.mxu0 %vm5614_vm2, %v4731_v50 }
 0x28c   :  { %4405 = vmatprep.mubr.msk.f32.mxu0 %vm574_vm1, %v795_v29  ;;  %v5699_v29 = vld [vmem:[%s6203_s1 + $0x18] sm:$0xff] }
 0x28d   :  { %v4977_v6 = vpop.permute.xlu1 %4976 }
 0x28e   :  { %v4979_v38 = vunpack.i.h.bf16 %v4977_v6  ;;  %v4978_v32 = vunpack.i.l.bf16 %v4977_v6 }
 0x28f   :  { %v886_v36 = vpop.permute.xlu0 %885 }
 0x290   :  { %v4737_v41 = vpack.c.bf16 %v4979_v38, %v4978_v32  ;;  %4412 = vmatprep.mubr.msk.f32.mxu1 %vm574_vm1, %v886_v36 }
 0x291   :  { %v797_v42 = vpop.permute.xlu1 %796 }
 0x292   :  { %4406 = vmatmul.mubr.msk.f32.vlgmr.msra.gmra.mrb[18].mxu0 %vm574_vm1, %v797_v42  ;;  %4739 = vmatprep.subr.msk.bf16.mxu1 %vm5614_vm2, %v4737_v41 }
 0x293   :  { %4742 = vmatpush3.bf16.xpose.msk.msra.mxu1 %vm5614_vm2, %v4737_v41  ;;  %v5707_v41 = vld [vmem:[%s6203_s1 + $0x10] sm:$0xff] }
 0x295   :  { %v888_v43 = vpop.permute.xlu1 %887 }
 0x29a   :  { %4413 = vmatmul.mubr.msk.f32.vlgmr.msra.gmra.mrb[10].mxu1 %vm574_vm1, %v888_v43 }
 0x2f0   :  { %v4393_v56 = vpop.f32.mrb[16].mxu0 }
 0x2f1   :  { %v653_v8 = vpop.f32.mrb[17].mxu0  ;;  %v659_v26 = vadd.f32 %v4393_v56, %v5685_v12 }
 0x2f3   :  { %v753_v32 = vsel %vm749_vm3, %v659_v26, -inf }
 0x2f6   :  { %v4400_v17 = vpop.f32.mrb[8].mxu1 }
 0x2f7   :  { %v740_v60 = vpop.f32.mrb[9].mxu1  ;;  %v746_v38 = vadd.f32 %v4400_v17, %v5699_v29  ;;  %v654_v17 = vadd.f32 %v653_v8, %v5690_v45 }
 0x2f9   :  { %v759_v56 = vsel %vm749_vm3, %v746_v38, -inf }
 0x365   :  { %v4407_v3 = vpop.f32.mrb[18].mxu0 }
 0x366   :  { %v882_v0 = vadd.f32 %v4407_v3, %v5685_v12  ;;  %v876_v21 = vpop.f32.mrb[19].mxu0 }
 0x367   :  { %v877_v23 = vadd.f32 %v876_v21, %v5690_v45 }
 0x368   :  { %v979_v50 = vsel %vm749_vm3, %v882_v0, -inf }
 0x369   :  { %980 = vmax.xlane.f32.xlu1 %v979_v50  ;;  %v976_v6 = vsel %vm749_vm3, %v877_v23, -inf }
 0x36a   :  { %977 = vmax.xlane.f32.xlu0 %v976_v6  ;;  %v741_v6 = vadd.f32 %v740_v60, %v5707_v41 }
 0x36d   :  { %v4414_v36 = vpop.f32.mrb[10].mxu1  ;;  %754 = vmax.xlane.f32.xlu1 %v753_v32  ;;  %v750_v32 = vsel %vm749_vm3, %v654_v17, -inf }
 0x36e   :  { %v967_v42 = vpop.f32.mrb[11].mxu1  ;;  %v973_v3 = vadd.f32 %v4414_v36, %v5699_v29 }
 0x36f   :  { %v968_v43 = vadd.f32 %v967_v42, %v5707_v41  ;;  %v756_v42 = vsel %vm749_vm3, %v741_v6, -inf }
 0x370   :  { %v985_v50 = vsel %vm749_vm3, %v973_v3, -inf }
 0x371   :  { %760 = vmax.xlane.f32.xlu1 %v759_v56  ;;  %v982_v21 = vsel %vm749_vm3, %v968_v43, -inf }
 0x372   :  { %983 = vmax.xlane.f32.xlu0 %v982_v21 }
 0x376   :  { %986 = vmax.xlane.f32.xlu0 %v985_v50 }
 0x37a   :  { %751 = vmax.xlane.f32.xlu0 %v750_v32 }
 0x37e   :  { %757 = vmax.xlane.f32.xlu0 %v756_v42 }
 0x3f6   :  { %v981_v14 = vpop.xlane.xlu1 %980 }
 0x3f7   :  { %v978_v36 = vpop.xlane.xlu0 %977  ;;  %v989_v27 = vsub.f32 %v882_v0, %v981_v14 }
 0x3f8   :  { %v988_v10 = vsub.f32 %v877_v23, %v978_v36 }
 0x3f9   :  { %v994_v61 = vmul.f32 1.442695, %v989_v27 }
 0x3fa   :  { %v755_v63 = vpop.xlane.xlu1 %754 }
 0x3fb   :  { %v763_v56 = vsub.f32 %v659_v26, %v755_v63  ;;  %v992_v26 = vmul.f32 1.442695, %v988_v10 }
 0x3fd   :  { %v768_v9 = vmul.f32 1.442695, %v763_v56 }
 0x3fe   :  { %v761_v21 = vpop.xlane.xlu1 %760 }
 0x3ff   :  { %5088 = vpow2.f32 %v768_v9  ;;  %v765_v8 = vsub.f32 %v746_v38, %v761_v21  ;;  %v984_v39 = vpop.xlane.xlu0 %983 }
 0x400   :  { %v990_v38 = vsub.f32 %v968_v43, %v984_v39 }
 0x401   :  { %v772_v50 = vmul.f32 1.442695, %v765_v8 }
 0x403   :  { %5090 = vpow2.f32 %v772_v50  ;;  %v987_v60 = vpop.xlane.xlu0 %986 }
 0x404   :  { %v991_v25 = vsub.f32 %v973_v3, %v987_v60  ;;  %5092 = vpow2.f32 %v994_v61 }
 0x406   :  { %v998_v32 = vmul.f32 1.442695, %v991_v25 }
 0x407   :  { %v752_v59 = vpop.xlane.xlu0 %751 }
 0x408   :  { %v762_v54 = vsub.f32 %v654_v17, %v752_v59  ;;  %5094 = vpow2.f32 %v998_v32 }
 0x409   :  { %v5718_v42 = vpop.eup %5088 }
 0x40a   :  { %v766_v63 = vmul.f32 1.442695, %v762_v54  ;;  %v777_v14 = vsel %vm749_vm3, %v5718_v42, 0.0  ;;  %v996_v54 = vmul.f32 1.442695, %v990_v38 }
 0x40b   :  { %778 = vadd.xlane.f32.xlu1 %v777_v14  ;;  %v758_v9 = vpop.xlane.xlu0 %757 }
 0x40c   :  { %5096 = vpow2.f32 %v766_v63  ;;  %v764_v27 = vsub.f32 %v741_v6, %v758_v9 }
 0x40d   :  { %v5722_v0 = vpop.eup %5090 }
 0x40e   :  { %v770_v61 = vmul.f32 1.442695, %v764_v27  ;;  %v783_v25 = vsel %vm749_vm3, %v5722_v0, 0.0  ;;  %v5726_v59 = vpop.eup %5092 }
 0x40f   :  { %784 = vadd.xlane.f32.xlu1 %v783_v25  ;;  %v1003_v23 = vsel %vm749_vm3, %v5726_v59, 0.0 }
 0x410   :  { %5098 = vpow2.f32 %v770_v61 }
 0x411   :  { %5100 = vpow2.f32 %v992_v26 }
 0x412   :  { %v5730_v3 = vpop.eup %5094  ;;  %5102 = vpow2.f32 %v996_v54 }
 0x413   :  { %1004 = vadd.xlane.f32.xlu1 %v1003_v23  ;;  %v1009_v10 = vsel %vm749_vm3, %v5730_v3, 0.0 }
 0x416   :  { %v5732_v17 = vpop.eup %5096 }
 0x417   :  { %1010 = vadd.xlane.f32.xlu1 %v1009_v10  ;;  %v774_v39 = vsel %vm749_vm3, %v5732_v17, 0.0 }
 0x418   :  { %775 = vadd.xlane.f32.xlu0 %v774_v39 }
 0x41a   :  { %v5738_v43 = vpop.eup %5098 }
 0x41b   :  { %v780_v6 = vsel %vm749_vm3, %v5738_v43, 0.0  ;;  %v5101_v36 = vpop.eup %5100 }
 0x41c   :  { %781 = vadd.xlane.f32.xlu0 %v780_v6  ;;  %v1000_v56 = vsel %vm749_vm3, %v5101_v36, 0.0  ;;  %v5103_v21 = vpop.eup %5102 }
 0x41d   :  { %v1006_v8 = vsel %vm749_vm3, %v5103_v21, 0.0 }
 0x420   :  { %1001 = vadd.xlane.f32.xlu0 %v1000_v56 }
 0x424   :  { %1007 = vadd.xlane.f32.xlu0 %v1006_v8 }
 0x428   :  { %4986 = vrot.lane.b32.xlu1 %v4985_v15, %s5293_s13 }
 0x42c   :  { %4991 = vrot.lane.b32.xlu1 %v5618_v24, %s5295_s16 }
 0x430   :  { %4996 = vrot.lane.b32.xlu1 %v5643_v33, %s5295_s16 }
 0x434   :  { %1362 = vrot.lane.b32.xlu1 %v5645_v19, %s5295_s16 }
 0x438   :  { %1453 = vrot.lane.b32.xlu1 %v5664_v4, %s5295_s16 }
 0x43a   :  { %4981 = vrot.lane.b32.xlu0 %v4980_v52, %s5293_s13 }
 0x43e   :  { %1360 = vrot.lane.b32.xlu0 %v5635_v2, %s5295_s16 }
 0x442   :  { %1451 = vrot.lane.b32.xlu0 %v5647_v20, %s5295_s16 }
 0x498   :  { %v779_v5 = vpop.xlane.xlu1 %778 }
 0x49c   :  { %v785_v7 = vpop.xlane.xlu1 %784 }
 0x4a0   :  { %v1005_v15 = vpop.xlane.xlu1 %1004 }
 0x4a4   :  { %v1011_v50 = vpop.xlane.xlu1 %1010 }
 0x4a5   :  { %v776_v60 = vpop.xlane.xlu0 %775 }
 0x4a8   :  { %v4987_v32 = vpop.permute.xlu1 %4986 }
 0x4a9   :  { %v4989_v63 = vunpack.i.h.bf16 %v4987_v32  ;;  %v4988_v14 = vunpack.i.l.bf16 %v4987_v32  ;;  %v782_v9 = vpop.xlane.xlu0 %781 }
 0x4ab   :  { %v4747_v27 = vpack.c.bf16 %v4989_v63, %v4988_v14 }
 0x4ac   :  { %v4992_v46 = vpop.permute.xlu1 %4991 }
 0x4ad   :  { %4748 = vmatprep.subr.bf16.mxu1 %v4747_v27  ;;  %v1002_v26 = vpop.xlane.xlu0 %1001  ;;  %v4994_v8 = vunpack.i.h.bf16 %v4992_v46 }
 0x4ae   :  { %5104 = vrcp.f32 %v1002_v26  ;;  %4750 = vmatpush3.bf16.msra.mxu1 %v4747_v27 }
 0x4af   :  { %5106 = vrcp.f32 %v1005_v15  ;;  %4756 = vmatprep.subr.bf16.mxu1 %v5539_v16  ;;  %v4993_v15 = vunpack.i.l.bf16 %v4992_v46 }
 0x4b0   :  { %5108 = vrcp.f32 %v1011_v50  ;;  %v4997_v10 = vpop.permute.xlu1 %4996 }
 0x4b1   :  { %5110 = vrcp.f32 %v776_v60  ;;  %v1008_v44 = vpop.xlane.xlu0 %1007  ;;  %v4999_v60 = vunpack.i.h.bf16 %v4997_v10  ;;  %v4998_v32 = vunpack.i.l.bf16 %v4997_v10 }
 0x4b2   :  { %5112 = vrcp.f32 %v1008_v44 }
 0x4b3   :  { %5114 = vrcp.f32 %v782_v9  ;;  %v4759_v9 = vpack.c.bf16 %v4994_v8, %v4993_v15  ;;  %v4765_v27 = vpack.c.bf16 %v4999_v60, %v4998_v32 }
 0x4b4   :  { %5116 = vrcp.f32 %v779_v5 }
 0x4b5   :  { %v4982_v52 = vpop.permute.xlu0 %4981  ;;  %5118 = vrcp.f32 %v785_v7 }
 0x4b6   :  { %v4984_v38 = vunpack.i.h.bf16 %v4982_v52  ;;  %v4983_v61 = vunpack.i.l.bf16 %v4982_v52 }
 0x4b8   :  { %v5105_v25 = vpop.eup %5104  ;;  %v4743_v54 = vpack.c.bf16 %v4984_v38, %v4983_v61 }
 0x4b9   :  { %v5107_v23 = vpop.eup %5106  ;;  %v1016_v39 = vmul.f32 %v5105_v25, %v5101_v36 }
 0x4ba   :  { %v5109_v6 = vpop.eup %5108  ;;  %4744 = vmatprep.subr.bf16.mxu0 %v4743_v54  ;;  %v1017_v5 = vmul.f32 %v5107_v23, %v5726_v59 }
 0x4bb   :  { %v5111_v56 = vpop.eup %5110  ;;  %4746 = vmatpush3.bf16.msra.mxu0 %v4743_v54  ;;  %4419 = vmatprep.mubr.msk.f32.mxu0 %vm749_vm3, %v1016_v39  ;;  %v1019_v7 = vmul.f32 %v5109_v6, %v5730_v3 }
 0x4bc   :  { %v5113_v50 = vpop.eup %5112  ;;  %4752 = vmatprep.subr.bf16.mxu0 %v5504_v53  ;;  %v790_v36 = vmul.f32 %v5111_v56, %v5732_v17  ;;  %v1361_v17 = vpop.permute.xlu0 %1360 }
 0x4bd   :  { %v5115_v63 = vpop.eup %5114  ;;  %v1018_v14 = vmul.f32 %v5113_v50, %v5103_v21 }
 0x4be   :  { %4420 = vmatmul.mubr.msk.f32.vlgmr.msra.gmra.mrb[20].mxu0 %vm749_vm3, %v1017_v5  ;;  %v792_v59 = vmul.f32 %v5115_v63, %v5738_v43  ;;  %v5117_v26 = vpop.eup %5116 }
 0x4bf   :  { %4426 = vmatprep.mubr.msk.f32.mxu1 %vm749_vm3, %v1018_v14  ;;  %4754 = vmatpush3.bf16.msra.mxu0 %v5504_v53  ;;  %v5119_v53 = vpop.eup %5118  ;;  %v791_v3 = vmul.f32 %v5117_v26, %v5718_v42 }
 0x4c0   :  { %4433 = vmatprep.mubr.msk.f32.mxu0 %vm749_vm3, %v790_v36  ;;  %4427 = vmatmul.mubr.msk.f32.vlgmr.msra.gmra.mrb[12].mxu1 %vm749_vm3, %v1019_v7  ;;  %v793_v21 = vmul.f32 %v5119_v53, %v5722_v0  ;;  %v1452_v43 = vpop.permute.xlu0 %1451 }
 0x4c1   :  { %4758 = vmatpush3.bf16.msra.mxu1 %v5539_v16  ;;  %4761 = vmatprep.subr.msk.bf16.mxu0 %vm5614_vm2, %v4759_v9  ;;  %v1363_v16 = vpop.permute.xlu1 %1362 }
 0x4c2   :  { %4440 = vmatprep.mubr.msk.f32.mxu1 %vm749_vm3, %v792_v59  ;;  %4767 = vmatprep.subr.msk.bf16.mxu1 %vm5614_vm2, %v4765_v27 }
 0x4c5   :  { %v1454_v42 = vpop.permute.xlu1 %1453 }
 0x4c6   :  { %4434 = vmatmul.mubr.msk.f32.vlgmr.msra.gmra.mrb[20].mxu0 %vm749_vm3, %v791_v3 }
 0x4c7   :  { %4447 = vmatprep.mubr.msk.f32.mxu0 %vm574_vm1, %v1361_v17 }
 0x4c8   :  { %4441 = vmatmul.mubr.msk.f32.vlgmr.msra.gmra.mrb[12].mxu1 %vm749_vm3, %v793_v21  ;;  %4764 = vmatpush3.bf16.xpose.msk.msra.mxu0 %vm5614_vm2, %v4759_v9 }
 0x4c9   :  { %4454 = vmatprep.mubr.msk.f32.mxu1 %vm574_vm1, %v1452_v43  ;;  %4772 = vmatprep.subr.bf16.mxu0 %v5510_v55 }
 0x4ca   :  { %4770 = vmatpush3.bf16.xpose.msk.msra.mxu1 %vm5614_vm2, %v4765_v27 }
 0x4cb   :  { %4776 = vmatprep.subr.bf16.mxu1 %v5546_v18 }
 0x4cf   :  { %4448 = vmatmul.mubr.msk.f32.vlgmr.msra.gmra.mrb[22].mxu0 %vm574_vm1, %v1363_v16 }
 0x4d0   :  { %4774 = vmatpush3.bf16.msra.mxu0 %v5510_v55 }
 0x4d1   :  { %4455 = vmatmul.mubr.msk.f32.vlgmr.msra.gmra.mrb[14].mxu1 %vm574_vm1, %v1454_v42 }
 0x4d2   :  { %4778 = vmatpush3.bf16.msra.mxu1 %v5546_v18 }
 0x5a2   :  { %v4449_v0 = vpop.f32.mrb[22].mxu0 }
 0x5a3   :  { %v1448_v44 = vadd.f32 %v4449_v0, %v5685_v12  ;;  %v1442_v46 = vpop.f32.mrb[23].mxu0 }
 0x5a4   :  { %v1443_v52 = vadd.f32 %v1442_v46, %v5690_v45  ;;  %v4456_v38 = vpop.f32.mrb[14].mxu1 }
 0x5a5   :  { %v1533_v61 = vpop.f32.mrb[15].mxu1  ;;  %v1545_v25 = vsel %vm749_vm3, %v1448_v44, -inf  ;;  %v1539_v55 = vadd.f32 %v4456_v38, %v5699_v29 }
 0x5a6   :  { %v1534_v54 = vadd.f32 %v1533_v61, %v5707_v41  ;;  %1546 = vmax.xlane.f32.xlu1 %v1545_v25  ;;  %v1542_v23 = vsel %vm749_vm3, %v1443_v52, -inf }
 0x5a7   :  { %1543 = vmax.xlane.f32.xlu0 %v1542_v23  ;;  %v1551_v10 = vsel %vm749_vm3, %v1539_v55, -inf }
 0x5a8   :  { %v1548_v18 = vsel %vm749_vm3, %v1534_v54, -inf }
 0x5ab   :  { %1549 = vmax.xlane.f32.xlu0 %v1548_v18 }
 0x5af   :  { %1552 = vmax.xlane.f32.xlu0 %v1551_v10 }
 0x633   :  { %v1547_v39 = vpop.xlane.xlu1 %1546 }
 0x634   :  { %v1555_v6 = vsub.f32 %v1448_v44, %v1547_v39  ;;  %v1544_v56 = vpop.xlane.xlu0 %1543 }
 0x635   :  { %v1554_v8 = vsub.f32 %v1443_v52, %v1544_v56 }
 0x636   :  { %v1560_v15 = vmul.f32 1.442695, %v1555_v6 }
 0x637   :  { %v1558_v50 = vmul.f32 1.442695, %v1554_v8 }
 0x638   :  { %5120 = vpow2.f32 %v1560_v15  ;;  %v1550_v60 = vpop.xlane.xlu0 %1549 }
 0x639   :  { %5122 = vpow2.f32 %v1558_v50  ;;  %v1556_v32 = vsub.f32 %v1534_v54, %v1550_v60 }
 0x63b   :  { %v1562_v5 = vmul.f32 1.442695, %v1556_v32 }
 0x63c   :  { %v1553_v63 = vpop.xlane.xlu0 %1552 }
 0x63d   :  { %5124 = vpow2.f32 %v1562_v5  ;;  %v1557_v14 = vsub.f32 %v1539_v55, %v1553_v63 }
 0x63f   :  { %v1564_v36 = vmul.f32 1.442695, %v1557_v14 }
 0x641   :  { %5126 = vpow2.f32 %v1564_v36 }
 0x642   :  { %v5121_v7 = vpop.eup %5120 }
 0x643   :  { %v5123_v9 = vpop.eup %5122  ;;  %v1569_v27 = vsel %vm749_vm3, %v5121_v7, 0.0 }
 0x644   :  { %1570 = vadd.xlane.f32.xlu1 %v1569_v27  ;;  %v1566_v59 = vsel %vm749_vm3, %v5123_v9, 0.0 }
 0x645   :  { %1567 = vadd.xlane.f32.xlu0 %v1566_v59 }
 0x647   :  { %v5125_v26 = vpop.eup %5124 }
 0x648   :  { %v1572_v17 = vsel %vm749_vm3, %v5125_v26, 0.0 }
 0x649   :  { %1573 = vadd.xlane.f32.xlu0 %v1572_v17 }
 0x64b   :  { %v5127_v53 = vpop.eup %5126 }
 0x64c   :  { %v1575_v3 = vsel %vm749_vm3, %v5127_v53, 0.0 }
 0x64d   :  { %1576 = vadd.xlane.f32.xlu1 %v1575_v3 }
 0x65e   :  { %5006 = vrot.lane.b32.xlu1 %v5643_v33, %s5296_s17 }
 0x65f   :  { %5001 = vrot.lane.b32.xlu0 %v5618_v24, %s5296_s17 }
 0x662   :  { %1752 = vrot.lane.b32.xlu1 %v5635_v2, %s5296_s17 }
 0x663   :  { %1843 = vrot.lane.b32.xlu0 %v5647_v20, %s5296_s17 }
 0x666   :  { %1754 = vrot.lane.b32.xlu1 %v5645_v19, %s5296_s17 }
 0x66a   :  { %1845 = vrot.lane.b32.xlu1 %v5664_v4, %s5296_s17 }
 0x6d1   :  { %v1571_v21 = vpop.xlane.xlu1 %1570 }
 0x6d2   :  { %5128 = vrcp.f32 %v1571_v21  ;;  %v1568_v43 = vpop.xlane.xlu0 %1567  ;;  %v6218_v21 = vpack.i.bf16 %v5531_v13, %v5527_v11 }
 0x6d3   :  { %5130 = vrcp.f32 %v1568_v43  ;;  %v6219_v43 = vpack.i.bf16 %v5497_v51, %v5493_v49 }
 0x6d6   :  { %v1574_v16 = vpop.xlane.xlu0 %1573 }
 0x6d7   :  { %5132 = vrcp.f32 %v1574_v16 }
 0x6da   :  { %v1577_v42 = vpop.xlane.xlu1 %1576  ;;  %v5002_v0 = vpop.permute.xlu0 %5001 }
 0x6db   :  { %5134 = vrcp.f32 %v1577_v42  ;;  %v5004_v44 = vunpack.i.h.bf16 %v5002_v0  ;;  %v5003_v46 = vunpack.i.l.bf16 %v5002_v0 }
 0x6dc   :  { %v5129_v52 = vpop.eup %5128 }
 0x6dd   :  { %v5131_v38 = vpop.eup %5130  ;;  %v4779_v61 = vpack.c.bf16 %v5004_v44, %v5003_v46  ;;  %v1583_v23 = vmul.f32 %v5129_v52, %v5121_v7 }
 0x6de   :  { %v5007_v25 = vpop.permute.xlu1 %5006  ;;  %v1582_v54 = vmul.f32 %v5131_v38, %v5123_v9  ;;  %v1844_v60 = vpop.permute.xlu0 %1843 }
 0x6df   :  { %v5009_v55 = vunpack.i.h.bf16 %v5007_v25  ;;  %v5008_v18 = vunpack.i.l.bf16 %v5007_v25  ;;  %4781 = vmatprep.subr.msk.bf16.mxu0 %vm5614_vm2, %v4779_v61 }
 0x6e0   :  { %4461 = vmatprep.mubr.msk.f32.mxu0 %vm749_vm3, %v1582_v54 }
 0x6e1   :  { %v5133_v10 = vpop.eup %5132  ;;  %v4785_v39 = vpack.c.bf16 %v5009_v55, %v5008_v18  ;;  %4462 = vmatmul.mubr.msk.f32.vlgmr.msra.gmra.mrb[20].mxu0 %vm749_vm3, %v1583_v23 }
 0x6e2   :  { %4784 = vmatpush3.bf16.xpose.msk.msra.mxu0 %vm5614_vm2, %v4779_v61  ;;  %v1753_v6 = vpop.permute.xlu1 %1752  ;;  %v1584_v56 = vmul.f32 %v5133_v10, %v5125_v26 }
 0x6e3   :  { %4475 = vmatprep.mubr.msk.f32.mxu0 %vm574_vm1, %v1753_v6  ;;  %4787 = vmatprep.subr.msk.bf16.mxu1 %vm5614_vm2, %v4785_v39 }
 0x6e4   :  { %4468 = vmatprep.mubr.msk.f32.mxu1 %vm749_vm3, %v1584_v56 }
 0x6e5   :  { %v5135_v8 = vpop.eup %5134 }
 0x6e6   :  { %v1585_v15 = vmul.f32 %v5135_v8, %v5127_v53  ;;  %v1755_v50 = vpop.permute.xlu1 %1754 }
 0x6e8   :  { %4469 = vmatmul.mubr.msk.f32.vlgmr.msra.gmra.mrb[12].mxu1 %vm749_vm3, %v1585_v15 }
 0x6e9   :  { %4476 = vmatmul.mubr.msk.f32.vlgmr.msra.gmra.mrb[24].mxu0 %vm574_vm1, %v1755_v50  ;;  %4790 = vmatpush3.bf16.xpose.msk.msra.mxu1 %vm5614_vm2, %v4785_v39 }
 0x6ea   :  { %4482 = vmatprep.mubr.msk.f32.mxu1 %vm574_vm1, %v1844_v60  ;;  %v1846_v32 = vpop.permute.xlu1 %1845 }
 0x6f0   :  { %4483 = vmatmul.mubr.msk.f32.vlgmr.msra.gmra.mrb[16].mxu1 %vm574_vm1, %v1846_v32 }
 0x7bc   :  { %v4477_v5 = vpop.f32.mrb[24].mxu0 }
 0x7bd   :  { %v1840_v63 = vadd.f32 %v4477_v5, %v5685_v12  ;;  %v1834_v14 = vpop.f32.mrb[25].mxu0 }
 0x7be   :  { %v1835_v36 = vadd.f32 %v1834_v14, %v5690_v45 }
 0x7bf   :  { %v1937_v7 = vsel %vm749_vm3, %v1840_v63, -inf }
 0x7c0   :  { %1938 = vmax.xlane.f32.xlu1 %v1937_v7  ;;  %v1934_v9 = vsel %vm749_vm3, %v1835_v36, -inf }
 0x7c1   :  { %1935 = vmax.xlane.f32.xlu0 %v1934_v9 }
 0x7c3   :  { %v4484_v27 = vpop.f32.mrb[16].mxu1 }
 0x7c4   :  { %v1925_v59 = vpop.f32.mrb[17].mxu1  ;;  %v1931_v17 = vadd.f32 %v4484_v27, %v5699_v29 }
 0x7c5   :  { %v1926_v26 = vadd.f32 %v1925_v59, %v5707_v41 }
 0x7c6   :  { %v1943_v3 = vsel %vm749_vm3, %v1931_v17, -inf }
 0x7c7   :  { %v1940_v53 = vsel %vm749_vm3, %v1926_v26, -inf }
 0x7c8   :  { %1941 = vmax.xlane.f32.xlu0 %v1940_v53 }
 0x7cc   :  { %1944 = vmax.xlane.f32.xlu0 %v1943_v3 }
 0x7d1   :  { %5016 = vrot.lane.b32.xlu1 %v6218_v21, %s5293_s13 }
 0x7d5   :  { %5021 = vrot.lane.b32.xlu1 %v5618_v24, %s5297_s18 }
 0x7d9   :  { %5026 = vrot.lane.b32.xlu1 %v5643_v33, %s5297_s18 }
 0x7e2   :  { %5011 = vrot.lane.b32.xlu0 %v6219_v43, %s5293_s13 }
 0x84d   :  { %v1939_v16 = vpop.xlane.xlu1 %1938 }
 0x84e   :  { %v1947_v42 = vsub.f32 %v1840_v63, %v1939_v16  ;;  %v1936_v0 = vpop.xlane.xlu0 %1935 }
 0x84f   :  { %v1946_v44 = vsub.f32 %v1835_v36, %v1936_v0 }
 0x850   :  { %v1952_v46 = vmul.f32 1.442695, %v1947_v42 }
 0x851   :  { %v1950_v52 = vmul.f32 1.442695, %v1946_v44  ;;  %v5017_v11 = vpop.permute.xlu1 %5016 }
 0x852   :  { %5136 = vpow2.f32 %v1952_v46  ;;  %v5019_v13 = vunpack.i.h.bf16 %v5017_v11  ;;  %v5018_v38 = vunpack.i.l.bf16 %v5017_v11 }
 0x853   :  { %5138 = vpow2.f32 %v1950_v52 }
 0x854   :  { %v4795_v61 = vpack.c.bf16 %v5019_v13, %v5018_v38 }
 0x855   :  { %v5022_v25 = vpop.permute.xlu1 %5021  ;;  %v1942_v54 = vpop.xlane.xlu0 %1941 }
 0x856   :  { %v1948_v23 = vsub.f32 %v1926_v26, %v1942_v54  ;;  %4796 = vmatprep.subr.bf16.mxu1 %v4795_v61  ;;  %v5024_v50 = vunpack.i.h.bf16 %v5022_v25  ;;  %v5023_v60 = vunpack.i.l.bf16 %v5022_v25 }
 0x857   :  { %4798 = vmatpush3.bf16.msra.mxu1 %v4795_v61 }
 0x858   :  { %v1954_v55 = vmul.f32 1.442695, %v1948_v23  ;;  %v4799_v9 = vpack.c.bf16 %v5024_v50, %v5023_v60 }
 0x859   :  { %v5027_v49 = vpop.permute.xlu1 %5026  ;;  %v1945_v51 = vpop.xlane.xlu0 %1944 }
 0x85a   :  { %5140 = vpow2.f32 %v1954_v55  ;;  %v5029_v18 = vunpack.i.h.bf16 %v5027_v49  ;;  %v5028_v10 = vunpack.i.l.bf16 %v5027_v49  ;;  %v1949_v39 = vsub.f32 %v1931_v17, %v1945_v51 }
 0x85c   :  { %v5137_v6 = vpop.eup %5136  ;;  %v4805_v56 = vpack.c.bf16 %v5029_v18, %v5028_v10  ;;  %v1956_v8 = vmul.f32 1.442695, %v1949_v39 }
 0x85d   :  { %v5139_v15 = vpop.eup %5138  ;;  %v5012_v32 = vpop.permute.xlu0 %5011  ;;  %v1961_v5 = vsel %vm749_vm3, %v5137_v6, 0.0 }
 0x85e   :  { %5142 = vpow2.f32 %v1956_v8  ;;  %v5014_v63 = vunpack.i.h.bf16 %v5012_v32  ;;  %v5013_v14 = vunpack.i.l.bf16 %v5012_v32  ;;  %1962 = vadd.xlane.f32.xlu1 %v1961_v5  ;;  %4807 = vmatprep.subr.msk.bf16.mxu1 %vm5614_vm2, %v4805_v56  ;;  %v1958_v36 = vsel %vm749_vm3, %v5139_v15, 0.0 }
 0x85f   :  { %1959 = vadd.xlane.f32.xlu0 %v1958_v36 }
 0x860   :  { %v4791_v7 = vpack.c.bf16 %v5014_v63, %v5013_v14 }
 0x862   :  { %4792 = vmatprep.subr.bf16.mxu0 %v4791_v7 }
 0x863   :  { %4794 = vmatpush3.bf16.msra.mxu0 %v4791_v7 }
 0x864   :  { %v5141_v27 = vpop.eup %5140  ;;  %4801 = vmatprep.subr.msk.bf16.mxu0 %vm5614_vm2, %v4799_v9 }
 0x865   :  { %v1964_v59 = vsel %vm749_vm3, %v5141_v27, 0.0 }
 0x866   :  { %1965 = vadd.xlane.f32.xlu0 %v1964_v59 }
 0x868   :  { %v5143_v26 = vpop.eup %5142 }
 0x869   :  { %v1967_v17 = vsel %vm749_vm3, %v5143_v26, 0.0 }
 0x86a   :  { %1968 = vadd.xlane.f32.xlu1 %v1967_v17 }
 0x87b   :  { %2162 = vrot.lane.b32.xlu1 %v5645_v19, %s5297_s18 }
 0x87c   :  { %2160 = vrot.lane.b32.xlu0 %v5635_v2, %s5297_s18 }
 0x87f   :  { %2253 = vrot.lane.b32.xlu1 %v5664_v4, %s5297_s18 }
 0x880   :  { %2251 = vrot.lane.b32.xlu0 %v5647_v20, %s5297_s18 }
 0x8eb   :  { %v1963_v53 = vpop.xlane.xlu1 %1962 }
 0x8ec   :  { %5144 = vrcp.f32 %v1963_v53  ;;  %v1960_v3 = vpop.xlane.xlu0 %1959 }
 0x8ed   :  { %5146 = vrcp.f32 %v1960_v3 }
 0x8f3   :  { %v1966_v21 = vpop.xlane.xlu0 %1965 }
 0x8f4   :  { %5148 = vrcp.f32 %v1966_v21 }
 0x8f6   :  { %v5145_v43 = vpop.eup %5144 }
 0x8f7   :  { %v5147_v16 = vpop.eup %5146  ;;  %v1969_v42 = vpop.xlane.xlu1 %1968  ;;  %v1975_v44 = vmul.f32 %v5145_v43, %v5137_v6 }
 0x8f8   :  { %5150 = vrcp.f32 %v1969_v42  ;;  %v1974_v0 = vmul.f32 %v5147_v16, %v5139_v15  ;;  %v2161_v46 = vpop.permute.xlu0 %2160 }
 0x8fa   :  { %4489 = vmatprep.mubr.msk.f32.mxu0 %vm749_vm3, %v1974_v0 }
 0x8fb   :  { %4490 = vmatmul.mubr.msk.f32.vlgmr.msra.gmra.mrb[20].mxu0 %vm749_vm3, %v1975_v44  ;;  %v2163_v38 = vpop.permute.xlu1 %2162 }
 0x8fc   :  { %4804 = vmatpush3.bf16.xpose.msk.msra.mxu0 %vm5614_vm2, %v4799_v9  ;;  %4503 = vmatprep.mubr.msk.f32.mxu0 %vm574_vm1, %v2161_v46  ;;  %v2252_v25 = vpop.permute.xlu0 %2251 }
 0x8fd   :  { %4812 = vmatprep.subr.bf16.mxu0 %v5574_v28 }
 0x8fe   :  { %v5149_v52 = vpop.eup %5148 }
 0x8ff   :  { %v1976_v11 = vmul.f32 %v5149_v52, %v5141_v27  ;;  %v2254_v54 = vpop.permute.xlu1 %2253 }
 0x901   :  { %4496 = vmatprep.mubr.msk.f32.mxu1 %vm749_vm3, %v1976_v11 }
 0x902   :  { %v5151_v13 = vpop.eup %5150 }
 0x903   :  { %v1977_v61 = vmul.f32 %v5151_v13, %v5143_v26  ;;  %4504 = vmatmul.mubr.msk.f32.vlgmr.msra.gmra.mrb[26].mxu0 %vm574_vm1, %v2163_v38 }
 0x904   :  { %4814 = vmatpush3.bf16.msra.mxu0 %v5574_v28 }
 0x905   :  { %4497 = vmatmul.mubr.msk.f32.vlgmr.msra.gmra.mrb[12].mxu1 %vm749_vm3, %v1977_v61 }
 0x906   :  { %4810 = vmatpush3.bf16.xpose.msk.msra.mxu1 %vm5614_vm2, %v4805_v56  ;;  %4510 = vmatprep.mubr.msk.f32.mxu1 %vm574_vm1, %v2252_v25 }
 0x907   :  { %4816 = vmatprep.subr.bf16.mxu1 %v5596_v1 }
 0x90d   :  { %4511 = vmatmul.mubr.msk.f32.vlgmr.msra.gmra.mrb[18].mxu1 %vm574_vm1, %v2254_v54 }
 0x90e   :  { %4818 = vmatpush3.bf16.msra.mxu1 %v5596_v1 }
 0x9d6   :  { %v4505_v23 = vpop.f32.mrb[26].mxu0 }
 0x9d7   :  { %v2248_v55 = vadd.f32 %v4505_v23, %v5685_v12  ;;  %v2242_v49 = vpop.f32.mrb[27].mxu0 }
 0x9d8   :  { %v2243_v28 = vadd.f32 %v2242_v49, %v5690_v45 }
 0x9d9   :  { %v2345_v51 = vsel %vm749_vm3, %v2248_v55, -inf }
 0x9da   :  { %2346 = vmax.xlane.f32.xlu1 %v2345_v51  ;;  %v2342_v18 = vsel %vm749_vm3, %v2243_v28, -inf }
 0x9db   :  { %2343 = vmax.xlane.f32.xlu0 %v2342_v18 }
 0x9e0   :  { %v4512_v10 = vpop.f32.mrb[18].mxu1 }
 0x9e1   :  { %v2333_v39 = vpop.f32.mrb[19].mxu1  ;;  %v2339_v56 = vadd.f32 %v4512_v10, %v5699_v29 }
 0x9e2   :  { %v2334_v6 = vadd.f32 %v2333_v39, %v5707_v41 }
 0x9e3   :  { %v2351_v8 = vsel %vm749_vm3, %v2339_v56, -inf }
 0x9e4   :  { %v2348_v1 = vsel %vm749_vm3, %v2334_v6, -inf }
 0x9e5   :  { %2349 = vmax.xlane.f32.xlu0 %v2348_v1 }
 0x9e9   :  { %2352 = vmax.xlane.f32.xlu0 %v2351_v8 }
 0xa67   :  { %v2347_v15 = vpop.xlane.xlu1 %2346 }
 0xa68   :  { %v2355_v50 = vsub.f32 %v2248_v55, %v2347_v15  ;;  %v2344_v60 = vpop.xlane.xlu0 %2343 }
 0xa69   :  { %v2354_v32 = vsub.f32 %v2243_v28, %v2344_v60 }
 0xa6a   :  { %v2360_v5 = vmul.f32 1.442695, %v2355_v50 }
 0xa6b   :  { %v2358_v63 = vmul.f32 1.442695, %v2354_v32 }
 0xa6c   :  { %5152 = vpow2.f32 %v2360_v5 }
 0xa6d   :  { %5154 = vpow2.f32 %v2358_v63 }
 0xa72   :  { %v2350_v14 = vpop.xlane.xlu0 %2349 }
 0xa73   :  { %v2356_v36 = vsub.f32 %v2334_v6, %v2350_v14 }
 0xa75   :  { %v2362_v7 = vmul.f32 1.442695, %v2356_v36 }
 0xa76   :  { %v5153_v9 = vpop.eup %5152  ;;  %v2353_v27 = vpop.xlane.xlu0 %2352 }
 0xa77   :  { %v5155_v59 = vpop.eup %5154  ;;  %5156 = vpow2.f32 %v2362_v7  ;;  %v2357_v26 = vsub.f32 %v2339_v56, %v2353_v27  ;;  %v2369_v17 = vsel %vm749_vm3, %v5153_v9, 0.0 }
 0xa78   :  { %2370 = vadd.xlane.f32.xlu1 %v2369_v17  ;;  %v2366_v53 = vsel %vm749_vm3, %v5155_v59, 0.0 }
 0xa79   :  { %v2364_v3 = vmul.f32 1.442695, %v2357_v26  ;;  %2367 = vadd.xlane.f32.xlu0 %v2366_v53 }
 0xa7b   :  { %5158 = vpow2.f32 %v2364_v3 }
 0xa81   :  { %v5157_v21 = vpop.eup %5156 }
 0xa82   :  { %v2372_v43 = vsel %vm749_vm3, %v5157_v21, 0.0 }
 0xa83   :  { %2373 = vadd.xlane.f32.xlu0 %v2372_v43 }
 0xa85   :  { %v5159_v16 = vpop.eup %5158 }
 0xa86   :  { %v2375_v42 = vsel %vm749_vm3, %v5159_v16, 0.0 }
 0xa87   :  { %2376 = vadd.xlane.f32.xlu1 %v2375_v42 }
 0xa98   :  { %5036 = vrot.lane.b32.xlu1 %v5643_v33, %s5298_s19 }
 0xa99   :  { %5031 = vrot.lane.b32.xlu0 %v5618_v24, %s5298_s19 }
 0xa9c   :  { %2552 = vrot.lane.b32.xlu1 %v5635_v2, %s5298_s19 }
 0xa9d   :  { %2643 = vrot.lane.b32.xlu0 %v5647_v20, %s5298_s19 }
 0xaa0   :  { %2554 = vrot.lane.b32.xlu1 %v5645_v19, %s5298_s19 }
 0xaa4   :  { %2645 = vrot.lane.b32.xlu1 %v5664_v4, %s5298_s19 }
 0xb05   :  { %v2371_v0 = vpop.xlane.xlu1 %2370 }
 0xb06   :  { %5160 = vrcp.f32 %v2371_v0  ;;  %v2368_v44 = vpop.xlane.xlu0 %2367 }
 0xb07   :  { %5162 = vrcp.f32 %v2368_v44 }
 0xb10   :  { %v5161_v46 = vpop.eup %5160  ;;  %v2374_v52 = vpop.xlane.xlu0 %2373 }
 0xb11   :  { %v5163_v11 = vpop.eup %5162  ;;  %5164 = vrcp.f32 %v2374_v52  ;;  %v2383_v38 = vmul.f32 %v5161_v46, %v5153_v9 }
 0xb12   :  { %v2382_v13 = vmul.f32 %v5163_v11, %v5155_v59 }
 0xb14   :  { %v2377_v61 = vpop.xlane.xlu1 %2376  ;;  %4517 = vmatprep.mubr.msk.f32.mxu0 %vm749_vm3, %v2382_v13  ;;  %v5032_v25 = vpop.permute.xlu0 %5031 }
 0xb15   :  { %5166 = vrcp.f32 %v2377_v61  ;;  %v5034_v54 = vunpack.i.h.bf16 %v5032_v25  ;;  %v5033_v23 = vunpack.i.l.bf16 %v5032_v25  ;;  %4518 = vmatmul.mubr.msk.f32.vlgmr.msra.gmra.mrb[20].mxu0 %vm749_vm3, %v2383_v38 }
 0xb17   :  { %v4819_v55 = vpack.c.bf16 %v5034_v54, %v5033_v23 }
 0xb18   :  { %v5037_v49 = vpop.permute.xlu1 %5036  ;;  %v2644_v15 = vpop.permute.xlu0 %2643 }
 0xb19   :  { %v5039_v28 = vunpack.i.h.bf16 %v5037_v49  ;;  %v5038_v51 = vunpack.i.l.bf16 %v5037_v49  ;;  %4821 = vmatprep.subr.msk.bf16.mxu0 %vm5614_vm2, %v4819_v55 }
 0xb1a   :  { %4824 = vmatpush3.bf16.xpose.msk.msra.mxu0 %vm5614_vm2, %v4819_v55 }
 0xb1b   :  { %v5165_v18 = vpop.eup %5164  ;;  %v4825_v10 = vpack.c.bf16 %v5039_v28, %v5038_v51 }
 0xb1c   :  { %v2553_v39 = vpop.permute.xlu1 %2552  ;;  %v2384_v6 = vmul.f32 %v5165_v18, %v5157_v21 }
 0xb1d   :  { %4531 = vmatprep.mubr.msk.f32.mxu0 %vm574_vm1, %v2553_v39  ;;  %4827 = vmatprep.subr.msk.bf16.mxu1 %vm5614_vm2, %v4825_v10 }
 0xb1e   :  { %4524 = vmatprep.mubr.msk.f32.mxu1 %vm749_vm3, %v2384_v6 }
 0xb1f   :  { %v5167_v56 = vpop.eup %5166 }
 0xb20   :  { %v2385_v1 = vmul.f32 %v5167_v56, %v5159_v16  ;;  %v2555_v8 = vpop.permute.xlu1 %2554 }
 0xb21   :  { %4532 = vmatmul.mubr.msk.f32.vlgmr.msra.gmra.mrb[28].mxu0 %vm574_vm1, %v2555_v8 }
 0xb22   :  { %4525 = vmatmul.mubr.msk.f32.vlgmr.msra.gmra.mrb[12].mxu1 %vm749_vm3, %v2385_v1 }
 0xb23   :  { %4830 = vmatpush3.bf16.xpose.msk.msra.mxu1 %vm5614_vm2, %v4825_v10  ;;  %4538 = vmatprep.mubr.msk.f32.mxu1 %vm574_vm1, %v2644_v15 }
 0xb24   :  { %v2646_v50 = vpop.permute.xlu1 %2645 }
 0xb2a   :  { %4539 = vmatmul.mubr.msk.f32.vlgmr.msra.gmra.mrb[20].mxu1 %vm574_vm1, %v2646_v50 }
 0xbf4   :  { %v4533_v60 = vpop.f32.mrb[28].mxu0 }
 0xbf5   :  { %v2640_v32 = vadd.f32 %v4533_v60, %v5685_v12  ;;  %v2634_v5 = vpop.f32.mrb[29].mxu0 }
 0xbf6   :  { %v2635_v63 = vadd.f32 %v2634_v5, %v5690_v45  ;;  %v6220_v45 = vpack.i.bf16 %v5586_v48, %v5584_v47 }
 0xbf7   :  { %v2737_v14 = vsel %vm749_vm3, %v2640_v32, -inf }
 0xbf8   :  { %2738 = vmax.xlane.f32.xlu1 %v2737_v14  ;;  %v2734_v36 = vsel %vm749_vm3, %v2635_v63, -inf }
 0xbf9   :  { %2735 = vmax.xlane.f32.xlu0 %v2734_v36 }
 0xbfd   :  { %v4540_v7 = vpop.f32.mrb[20].mxu1 }
 0xbfe   :  { %v2725_v9 = vpop.f32.mrb[21].mxu1  ;;  %v2731_v59 = vadd.f32 %v4540_v7, %v5699_v29  ;;  %v6221_v29 = vpack.i.bf16 %v5562_v31, %v5560_v30 }
 0xbff   :  { %v2726_v27 = vadd.f32 %v2725_v9, %v5707_v41 }
 0xc00   :  { %v2743_v12 = vsel %vm749_vm3, %v2731_v59, -inf }
 0xc01   :  { %v2740_v26 = vsel %vm749_vm3, %v2726_v27, -inf }
 0xc02   :  { %2741 = vmax.xlane.f32.xlu0 %v2740_v26 }
 0xc06   :  { %2744 = vmax.xlane.f32.xlu0 %v2743_v12 }
 0xc09   :  { %5046 = vrot.lane.b32.xlu1 %v6220_v45, %s5293_s13 }
 0xc0d   :  { %5051 = vrot.lane.b32.xlu1 %v5618_v24, %s5299_s20 }
 0xc11   :  { %5056 = vrot.lane.b32.xlu1 %v5643_v33, %s5299_s20 }
 0xc1c   :  { %5041 = vrot.lane.b32.xlu0 %v6221_v29, %s5293_s13 }
 0xc85   :  { %v2739_v41 = vpop.xlane.xlu1 %2738 }
 0xc86   :  { %v2747_v17 = vsub.f32 %v2640_v32, %v2739_v41  ;;  %v2736_v53 = vpop.xlane.xlu0 %2735 }
 0xc87   :  { %v2746_v3 = vsub.f32 %v2635_v63, %v2736_v53 }
 0xc88   :  { %v2752_v21 = vmul.f32 1.442695, %v2747_v17 }
 0xc89   :  { %v2750_v43 = vmul.f32 1.442695, %v2746_v3  ;;  %v5047_v47 = vpop.permute.xlu1 %5046 }
 0xc8a   :  { %5168 = vpow2.f32 %v2752_v21  ;;  %v5049_v48 = vunpack.i.h.bf16 %v5047_v47  ;;  %v5048_v16 = vunpack.i.l.bf16 %v5047_v47 }
 0xc8b   :  { %5170 = vpow2.f32 %v2750_v43  ;;  %v5973_v43 = vld [vmem:[%s6203_s1] sm:$0xff] }
 0xc8c   :  { %v4835_v42 = vpack.c.bf16 %v5049_v48, %v5048_v16 }
 0xc8d   :  { %v5052_v0 = vpop.permute.xlu1 %5051 }
 0xc8e   :  { %4836 = vmatprep.subr.bf16.mxu1 %v4835_v42  ;;  %v5054_v28 = vunpack.i.h.bf16 %v5052_v0  ;;  %v5053_v18 = vunpack.i.l.bf16 %v5052_v0  ;;  %v5981_v0 = vld [vmem:[%s6203_s1 + $0x10] sm:$0xff] }
 0xc8f   :  { %v2742_v44 = vpop.xlane.xlu0 %2741  ;;  %4838 = vmatpush3.bf16.msra.mxu1 %v4835_v42 }
 0xc90   :  { %v2748_v46 = vsub.f32 %v2726_v27, %v2742_v44  ;;  %v4839_v56 = vpack.c.bf16 %v5054_v28, %v5053_v18 }
 0xc91   :  { %v5057_v52 = vpop.permute.xlu1 %5056 }
 0xc92   :  { %v2754_v30 = vmul.f32 1.442695, %v2748_v46  ;;  %v5059_v31 = vunpack.i.h.bf16 %v5057_v52  ;;  %v5058_v11 = vunpack.i.l.bf16 %v5057_v52  ;;  %v5987_v46 = vld [vmem:[%s6203_s1 + $0x18] sm:$0xff] }
 0xc93   :  { %v2745_v13 = vpop.xlane.xlu0 %2744 }
 0xc94   :  { %v5169_v38 = vpop.eup %5168  ;;  %5172 = vpow2.f32 %v2754_v30  ;;  %v4845_v61 = vpack.c.bf16 %v5059_v31, %v5058_v11  ;;  %v2749_v25 = vsub.f32 %v2731_v59, %v2745_v13 }
 0xc95   :  { %v5171_v54 = vpop.eup %5170  ;;  %v2761_v23 = vsel %vm749_vm3, %v5169_v38, 0.0 }
 0xc96   :  { %v2756_v55 = vmul.f32 1.442695, %v2749_v25  ;;  %2762 = vadd.xlane.f32.xlu1 %v2761_v23  ;;  %4847 = vmatprep.subr.msk.bf16.mxu1 %vm5614_vm2, %v4845_v61  ;;  %v2758_v49 = vsel %vm749_vm3, %v5171_v54, 0.0 }
 0xc97   :  { %v5042_v51 = vpop.permute.xlu0 %5041  ;;  %2759 = vadd.xlane.f32.xlu0 %v2758_v49 }
 0xc98   :  { %5174 = vpow2.f32 %v2756_v55  ;;  %v5044_v10 = vunpack.i.h.bf16 %v5042_v51  ;;  %v5043_v39 = vunpack.i.l.bf16 %v5042_v51 }
 0xc9a   :  { %v4831_v6 = vpack.c.bf16 %v5044_v10, %v5043_v39 }
 0xc9c   :  { %4832 = vmatprep.subr.bf16.mxu0 %v4831_v6 }
 0xc9d   :  { %4834 = vmatpush3.bf16.msra.mxu0 %v4831_v6 }
 0xc9e   :  { %v5173_v1 = vpop.eup %5172  ;;  %4841 = vmatprep.subr.msk.bf16.mxu0 %vm5614_vm2, %v4839_v56 }
 0xc9f   :  { %v2764_v8 = vsel %vm749_vm3, %v5173_v1, 0.0 }
 0xca0   :  { %2765 = vadd.xlane.f32.xlu0 %v2764_v8 }
 0xca2   :  { %v5175_v15 = vpop.eup %5174 }
 0xca3   :  { %v2767_v50 = vsel %vm749_vm3, %v5175_v15, 0.0 }
 0xca4   :  { %2768 = vadd.xlane.f32.xlu1 %v2767_v50 }
 0xcb5   :  { %2962 = vrot.lane.b32.xlu1 %v5645_v19, %s5299_s20 }
 0xcb6   :  { %2960 = vrot.lane.b32.xlu0 %v5635_v2, %s5299_s20 }
 0xcb9   :  { %3053 = vrot.lane.b32.xlu1 %v5664_v4, %s5299_s20 }
 0xcba   :  { %3051 = vrot.lane.b32.xlu0 %v5647_v20, %s5299_s20 }
 0xd23   :  { %v2763_v60 = vpop.xlane.xlu1 %2762 }
 0xd24   :  { %5176 = vrcp.f32 %v2763_v60  ;;  %v2760_v32 = vpop.xlane.xlu0 %2759 }
 0xd25   :  { %5178 = vrcp.f32 %v2760_v32 }
 0xd2d   :  { %v2766_v5 = vpop.xlane.xlu0 %2765 }
 0xd2e   :  { %v5177_v63 = vpop.eup %5176  ;;  %5180 = vrcp.f32 %v2766_v5 }
 0xd2f   :  { %v5179_v14 = vpop.eup %5178  ;;  %v2775_v7 = vmul.f32 %v5177_v63, %v5169_v38 }
 0xd30   :  { %v2774_v36 = vmul.f32 %v5179_v14, %v5171_v54 }
 0xd31   :  { %v2769_v9 = vpop.xlane.xlu1 %2768  ;;  %v2961_v27 = vpop.permute.xlu0 %2960 }
 0xd32   :  { %5182 = vrcp.f32 %v2769_v9  ;;  %4545 = vmatprep.mubr.msk.f32.mxu0 %vm749_vm3, %v2774_v36 }
 0xd33   :  { %4546 = vmatmul.mubr.msk.f32.vlgmr.msra.gmra.mrb[20].mxu0 %vm749_vm3, %v2775_v7 }
 0xd34   :  { %4844 = vmatpush3.bf16.xpose.msk.msra.mxu0 %vm5614_vm2, %v4839_v56  ;;  %4559 = vmatprep.mubr.msk.f32.mxu0 %vm574_vm1, %v2961_v27 }
 0xd35   :  { %4852 = vmatprep.subr.bf16.mxu0 %v5581_v40  ;;  %v2963_v12 = vpop.permute.xlu1 %2962  ;;  %v3052_v41 = vpop.permute.xlu0 %3051 }
 0xd38   :  { %v5181_v59 = vpop.eup %5180 }
 0xd39   :  { %v2776_v26 = vmul.f32 %v5181_v59, %v5173_v1  ;;  %v3054_v17 = vpop.permute.xlu1 %3053 }
 0xd3b   :  { %4552 = vmatprep.mubr.msk.f32.mxu1 %vm749_vm3, %v2776_v26  ;;  %4560 = vmatmul.mubr.msk.f32.vlgmr.msra.gmra.mrb[30].mxu0 %vm574_vm1, %v2963_v12 }
 0xd3c   :  { %v5183_v45 = vpop.eup %5182  ;;  %4854 = vmatpush3.bf16.msra.mxu0 %v5581_v40  ;;  %v5967_v40 = vld [vmem:[%s6203_s1 + $0x8] sm:$0xff]  ;;  %s5300_s1 = smov 72  }
 0xd3d   :  { %v2777_v29 = vmul.f32 %v5183_v45, %v5175_v15 }
 0xd3f   :  { %4553 = vmatmul.mubr.msk.f32.vlgmr.msra.gmra.mrb[12].mxu1 %vm749_vm3, %v2777_v29 }
 0xd40   :  { %4850 = vmatpush3.bf16.xpose.msk.msra.mxu1 %vm5614_vm2, %v4845_v61  ;;  %4566 = vmatprep.mubr.msk.f32.mxu1 %vm574_vm1, %v3052_v41 }
 0xd41   :  { %4856 = vmatprep.subr.bf16.mxu1 %v5602_v62 }
 0xd47   :  { %4567 = vmatmul.mubr.msk.f32.vlgmr.msra.gmra.mrb[22].mxu1 %vm574_vm1, %v3054_v17 }
 0xd48   :  { %4858 = vmatpush3.bf16.msra.mxu1 %v5602_v62 }
 0xe0e   :  { %v4561_v53 = vpop.f32.mrb[30].mxu0 }
 0xe0f   :  { %v3048_v3 = vadd.f32 %v5967_v40, %v4561_v53  ;;  %v3042_v21 = vpop.f32.mrb[31].mxu0 }
 0xe10   :  { %v3043_v47 = vadd.f32 %v5973_v43, %v3042_v21 }
 0xe11   :  { %v3145_v48 = vsel %vm749_vm3, %v3048_v3, -inf }
 0xe12   :  { %3146 = vmax.xlane.f32.xlu1 %v3145_v48  ;;  %v3142_v62 = vsel %vm749_vm3, %v3043_v47, -inf }
 0xe13   :  { %3143 = vmax.xlane.f32.xlu0 %v3142_v62 }
 0xe1a   :  { %v4568_v16 = vpop.f32.mrb[22].mxu1 }
 0xe1b   :  { %v3133_v42 = vpop.f32.mrb[23].mxu1  ;;  %v3139_v52 = vadd.f32 %v5987_v46, %v4568_v16 }
 0xe1c   :  { %v3134_v44 = vadd.f32 %v5981_v0, %v3133_v42 }
 0xe1d   :  { %v3151_v31 = vsel %vm749_vm3, %v3139_v52, -inf }
 0xe1e   :  { %v3148_v30 = vsel %vm749_vm3, %v3134_v44, -inf }
 0xe1f   :  { %3149 = vmax.xlane.f32.xlu0 %v3148_v30 }
 0xe23   :  { %3152 = vmax.xlane.f32.xlu0 %v3151_v31 }
 0xe9f   :  { %v3147_v11 = vpop.xlane.xlu1 %3146 }
 0xea0   :  { %v3155_v13 = vsub.f32 %v3048_v3, %v3147_v11  ;;  %v3144_v38 = vpop.xlane.xlu0 %3143 }
 0xea1   :  { %v3154_v61 = vsub.f32 %v3043_v47, %v3144_v38 }
 0xea2   :  { %v3160_v25 = vmul.f32 1.442695, %v3155_v13 }
 0xea3   :  { %v3158_v54 = vmul.f32 1.442695, %v3154_v61 }
 0xea4   :  { %5184 = vpow2.f32 %v3160_v25 }
 0xea5   :  { %5186 = vpow2.f32 %v3158_v54 }
 0xeac   :  { %v3150_v23 = vpop.xlane.xlu0 %3149 }
 0xead   :  { %v3156_v55 = vsub.f32 %v3134_v44, %v3150_v23 }
 0xeae   :  { %v5185_v49 = vpop.eup %5184 }
 0xeaf   :  { %v5187_v28 = vpop.eup %5186  ;;  %v3162_v51 = vmul.f32 1.442695, %v3156_v55  ;;  %v3169_v18 = vsel %vm749_vm3, %v5185_v49, 0.0 }
 0xeb0   :  { %v3153_v10 = vpop.xlane.xlu0 %3152  ;;  %3170 = vadd.xlane.f32.xlu1 %v3169_v18  ;;  %v3166_v39 = vsel %vm749_vm3, %v5187_v28, 0.0 }
 0xeb1   :  { %5188 = vpow2.f32 %v3162_v51  ;;  %v3157_v6 = vsub.f32 %v3139_v52, %v3153_v10  ;;  %3167 = vadd.xlane.f32.xlu0 %v3166_v39 }
 0xeb3   :  { %v3164_v56 = vmul.f32 1.442695, %v3157_v6 }
 0xeb5   :  { %5190 = vpow2.f32 %v3164_v56 }
 0xebb   :  { %v5189_v1 = vpop.eup %5188 }
 0xebc   :  { %v3172_v8 = vsel %vm749_vm3, %v5189_v1, 0.0 }
 0xebd   :  { %3173 = vadd.xlane.f32.xlu0 %v3172_v8  ;;  %v6222_v8 = vpack.i.bf16 %v5590_v58, %v5588_v57 }
 0xebf   :  { %v5191_v15 = vpop.eup %5190 }
 0xec0   :  { %v3175_v50 = vsel %vm749_vm3, %v5191_v15, 0.0 }
 0xec1   :  { %3176 = vadd.xlane.f32.xlu1 %v3175_v50 }
 0xed2   :  { %5066 = vrot.lane.b32.xlu1 %v5643_v33, %s5300_s1 }
 0xed3   :  { %5061 = vrot.lane.b32.xlu0 %v5618_v24, %s5300_s1 }
 0xed6   :  { %3352 = vrot.lane.b32.xlu1 %v5635_v2, %s5300_s1 }
 0xed7   :  { %3443 = vrot.lane.b32.xlu0 %v5647_v20, %s5300_s1 }
 0xeda   :  { %3354 = vrot.lane.b32.xlu1 %v5645_v19, %s5300_s1 }
 0xede   :  { %3445 = vrot.lane.b32.xlu1 %v5664_v4, %s5300_s1 }
 0xf3d   :  { %v3171_v60 = vpop.xlane.xlu1 %3170 }
 0xf3e   :  { %5192 = vrcp.f32 %v3171_v60  ;;  %v3168_v32 = vpop.xlane.xlu0 %3167 }
 0xf3f   :  { %5194 = vrcp.f32 %v3168_v32 }
 0xf48   :  { %v5193_v5 = vpop.eup %5192 }
 0xf49   :  { %v5195_v63 = vpop.eup %5194  ;;  %v3183_v7 = vmul.f32 %v5193_v5, %v5185_v49 }
 0xf4a   :  { %v3174_v14 = vpop.xlane.xlu0 %3173  ;;  %v3182_v36 = vmul.f32 %v5195_v63, %v5187_v28 }
 0xf4b   :  { %5196 = vrcp.f32 %v3174_v14 }
 0xf4c   :  { %4573 = vmatprep.mubr.msk.f32.mxu0 %vm749_vm3, %v3182_v36 }
 0xf4d   :  { %4574 = vmatmul.mubr.msk.f32.vlgmr.msra.gmra.mrb[20].mxu0 %vm749_vm3, %v3183_v7 }
 0xf4e   :  { %v3177_v24 = vpop.xlane.xlu1 %3176  ;;  %v5062_v2 = vpop.permute.xlu0 %5061 }
 0xf4f   :  { %5198 = vrcp.f32 %v3177_v24  ;;  %v5064_v33 = vunpack.i.h.bf16 %v5062_v2  ;;  %v5063_v19 = vunpack.i.l.bf16 %v5062_v2 }
 0xf51   :  { %v4859_v20 = vpack.c.bf16 %v5064_v33, %v5063_v19 }
 0xf52   :  { %v5067_v4 = vpop.permute.xlu1 %5066  ;;  %v3444_v53 = vpop.permute.xlu0 %3443 }
 0xf53   :  { %v5069_v9 = vunpack.i.h.bf16 %v5067_v4  ;;  %v5068_v27 = vunpack.i.l.bf16 %v5067_v4  ;;  %4861 = vmatprep.subr.msk.bf16.mxu0 %vm5614_vm2, %v4859_v20 }
 0xf54   :  { %4864 = vmatpush3.bf16.xpose.msk.msra.mxu0 %vm5614_vm2, %v4859_v20 }
 0xf55   :  { %v5197_v59 = vpop.eup %5196  ;;  %v4865_v26 = vpack.c.bf16 %v5069_v9, %v5068_v27 }
 0xf56   :  { %v3353_v12 = vpop.permute.xlu1 %3352  ;;  %v3184_v45 = vmul.f32 %v5197_v59, %v5189_v1  ;;  %v6045_v59 = vld [vmem:[%s6207_s5] sm:$0x3f] }
 0xf57   :  { %4587 = vmatprep.mubr.msk.f32.mxu0 %vm574_vm1, %v3353_v12  ;;  %4867 = vmatprep.subr.msk.bf16.mxu1 %vm5614_vm2, %v4865_v26 }
 0xf58   :  { %4580 = vmatprep.mubr.msk.f32.mxu1 %vm749_vm3, %v3184_v45 }
 0xf59   :  { %v5199_v29 = vpop.eup %5198 }
 0xf5a   :  { %v3185_v41 = vmul.f32 %v5199_v29, %v5191_v15  ;;  %v3355_v17 = vpop.permute.xlu1 %3354  ;;  %v6223_v15 = vpack.i.bf16 %v5566_v35, %v5564_v34 }
 0xf5b   :  { %4588 = vmatmul.mubr.msk.f32.vlgmr.msra.gmra.mrb[32].mxu0 %vm574_vm1, %v3355_v17 }
 0xf5c   :  { %4581 = vmatmul.mubr.msk.f32.vlgmr.msra.gmra.mrb[12].mxu1 %vm749_vm3, %v3185_v41 }
 0xf5d   :  { %4870 = vmatpush3.bf16.xpose.msk.msra.mxu1 %vm5614_vm2, %v4865_v26  ;;  %4594 = vmatprep.mubr.msk.f32.mxu1 %vm574_vm1, %v3444_v53  ;;  %v6224_v26 = vsub.s32 4, %v5424_v37  ;;  %v5237_v53 = vld [vmem:[%s6202_s0 + $0x8] sm:$0xff] }
 0xf5e   :  { %v3446_v3 = vpop.permute.xlu1 %3445 }
 0xf5f   :  { %v3763_v12 = vrot.slane %v6045_v59, %v6224_v26 }
 0xf64   :  { %4595 = vmatmul.mubr.msk.f32.vlgmr.msra.gmra.mrb[24].mxu1 %vm574_vm1, %v3446_v3 }
0x102e   :  { %v4589_v21 = vpop.f32.mrb[32].mxu0 }
0x102f   :  { %v3440_v47 = vadd.f32 %v5967_v40, %v4589_v21  ;;  %v3434_v48 = vpop.f32.mrb[33].mxu0  ;;  %v5238_v21 = vld [vmem:[%s6202_s0] sm:$0xff] }
0x1030   :  { %v3435_v62 = vadd.f32 %v5973_v43, %v3434_v48 }
0x1031   :  { %v3537_v16 = vsel %vm749_vm3, %v3440_v47, -inf }
0x1032   :  { %3538 = vmax.xlane.f32.xlu1 %v3537_v16  ;;  %v3534_v42 = vsel %vm749_vm3, %v3435_v62, -inf }
0x1033   :  { %3535 = vmax.xlane.f32.xlu0 %v3534_v42 }
0x1037   :  { %v4596_v44 = vpop.f32.mrb[24].mxu1 }
0x1038   :  { %v3525_v22 = vpop.f32.mrb[25].mxu1  ;;  %v3531_v30 = vadd.f32 %v5987_v46, %v4596_v44 }
0x1039   :  { %v3526_v52 = vadd.f32 %v5981_v0, %v3525_v22 }
0x103a   :  { %v3543_v40 = vsel %vm749_vm3, %v3531_v30, -inf }
0x103b   :  { %v3540_v31 = vsel %vm749_vm3, %v3526_v52, -inf }
0x103c   :  { %3541 = vmax.xlane.f32.xlu0 %v3540_v31 }
0x1040   :  { %3544 = vmax.xlane.f32.xlu0 %v3543_v40  ;;  %v5239_v40 = vld [vmem:[%s6202_s0 + $0x10] sm:$0xff] }
0x10bf   :  { %v3539_v11 = vpop.xlane.xlu1 %3538 }
0x10c0   :  { %v3547_v43 = vsub.f32 %v3440_v47, %v3539_v11  ;;  %v3536_v13 = vpop.xlane.xlu0 %3535 }
0x10c1   :  { %v3546_v38 = vsub.f32 %v3435_v62, %v3536_v13 }
0x10c2   :  { %v3552_v61 = vmul.f32 1.442695, %v3547_v43  ;;  %v5240_v43 = vld [vmem:[%s6202_s0 + $0x18] sm:$0xff] }
0x10c3   :  { %v3550_v25 = vmul.f32 1.442695, %v3546_v38 }
0x10c4   :  { %5200 = vpow2.f32 %v3552_v61 }
0x10c5   :  { %5202 = vpow2.f32 %v3550_v25 }
0x10c9   :  { %v3542_v54 = vpop.xlane.xlu0 %3541 }
0x10ca   :  { %v3548_v23 = vsub.f32 %v3526_v52, %v3542_v54 }
0x10cc   :  { %v3554_v55 = vmul.f32 1.442695, %v3548_v23 }
0x10cd   :  { %v3545_v0 = vpop.xlane.xlu0 %3544 }
0x10ce   :  { %v5201_v49 = vpop.eup %5200  ;;  %5204 = vpow2.f32 %v3554_v55  ;;  %v3549_v46 = vsub.f32 %v3531_v30, %v3545_v0 }
0x10cf   :  { %v5203_v28 = vpop.eup %5202  ;;  %v3561_v51 = vsel %vm749_vm3, %v5201_v49, 0.0 }
0x10d0   :  { %v3556_v18 = vmul.f32 1.442695, %v3549_v46  ;;  %3562 = vadd.xlane.f32.xlu1 %v3561_v51  ;;  %v3558_v10 = vsel %vm749_vm3, %v5203_v28, 0.0  ;;  %v3849_v46 = vld [vmem:[%s6208_s6 + $0x8] sm:$0xff]  ;;  %v3850_v51 = vld [vmem:[%s6208_s6 + $0x10] sm:$0xff] }
0x10d1   :  { %3559 = vadd.xlane.f32.xlu0 %v3558_v10 }
0x10d2   :  { %5206 = vpow2.f32 %v3556_v18  ;;  %v3851_v18 = vld [vmem:[%s6208_s6 + $0x18] sm:$0xff] }
0x10d3   :  { %v4883_v10 = vpack.c.bf16 %v3851_v18, %v3850_v51 }
0x10d8   :  { %v5205_v39 = vpop.eup %5204 }
0x10d9   :  { %v3564_v6 = vsel %vm749_vm3, %v5205_v39, 0.0 }
0x10da   :  { %3565 = vadd.xlane.f32.xlu0 %v3564_v6  ;;  %v3853_v6 = vld [vmem:[%s6208_s6 + $0x28] sm:$0xff] }
0x10dc   :  { %v5207_v56 = vpop.eup %5206 }
0x10dd   :  { %v3567_v1 = vsel %vm749_vm3, %v5207_v56, 0.0 }
0x10de   :  { %3568 = vadd.xlane.f32.xlu1 %v3567_v1  ;;  %v3854_v1 = vld [vmem:[%s6208_s6 + $0x30] sm:$0xff] }
0x10ef   :  { %5076 = vrot.lane.b32.xlu1 %v6222_v8, %s5293_s13  ;;  %v3855_v8 = vld [vmem:[%s6208_s6 + $0x38] sm:$0xff] }
0x10f0   :  { %5071 = vrot.lane.b32.xlu0 %v6223_v15, %s5293_s13  ;;  %v4891_v15 = vpack.c.bf16 %v3855_v8, %v3854_v1 }
0x115d   :  { %v3563_v60 = vpop.xlane.xlu1 %3562 }
0x115e   :  { %v3560_v50 = vpop.xlane.xlu0 %3559 }
0x115f   :  { %5208 = vrcp.f32 %v3560_v50  ;;  %v3980_v50 = vld [vmem:[%s6210_s8] sm:$0xff] }
0x1160   :  { %5210 = vrcp.f32 %v3563_v60  ;;  %v3981_v60 = vld [vmem:[%s6210_s8 + $0x8] sm:$0xff] }
0x1167   :  { %v3566_v32 = vpop.xlane.xlu0 %3565 }
0x1168   :  { %5212 = vrcp.f32 %v3566_v32  ;;  %v3982_v32 = vld [vmem:[%s6210_s8 + $0x10] sm:$0xff] }
0x1169   :  { %v5209_v5 = vpop.eup %5208 }
0x116a   :  { %v3574_v63 = vmul.f32 %v5209_v5, %v5203_v28  ;;  %v5211_v58 = vpop.eup %5210  ;;  %v4895_v5 = vpack.c.bf16 %v3981_v60, %v3980_v50 }
0x116b   :  { %v3569_v14 = vpop.xlane.xlu1 %3568  ;;  %v5072_v36 = vpop.permute.xlu0 %5071  ;;  %v3575_v19 = vmul.f32 %v5211_v58, %v5201_v49  ;;  %v3848_v49 = vld [vmem:[%s6208_s6] sm:$0xff] }
0x116c   :  { %5214 = vrcp.f32 %v3569_v14  ;;  %v5074_v7 = vunpack.i.h.bf16 %v5072_v36  ;;  %v5073_v24 = vunpack.i.l.bf16 %v5072_v36  ;;  %4601 = vmatprep.mubr.msk.f32.mxu0 %vm749_vm3, %v3574_v63  ;;  %v4879_v28 = vpack.c.bf16 %v3849_v46, %v3848_v49  ;;  %v3983_v63 = vld [vmem:[%s6210_s8 + $0x18] sm:$0xff]  ;;  %v3984_v36 = vld [vmem:[%s6210_s8 + $0x20] sm:$0xff] }
0x116d   :  { %v4899_v14 = vpack.c.bf16 %v3983_v63, %v3982_v32  ;;  %v3987_v63 = vld [vmem:[%s6210_s8 + $0x38] sm:$0xff] }
0x116e   :  { %v4871_v57 = vpack.c.bf16 %v5074_v7, %v5073_v24  ;;  %v3985_v7 = vld [vmem:[%s6210_s8 + $0x28] sm:$0xff] }
0x116f   :  { %v5077_v2 = vpop.permute.xlu1 %5076  ;;  %v4903_v24 = vpack.c.bf16 %v3985_v7, %v3984_v36  ;;  %v3988_v36 = vld [vmem:[%s6210_s8 + $0x40] sm:$0xff]  ;;  %v3989_v7 = vld [vmem:[%s6210_s8 + $0x48] sm:$0xff] }
0x1170   :  { %v5079_v34 = vunpack.i.h.bf16 %v5077_v2  ;;  %v5078_v35 = vunpack.i.l.bf16 %v5077_v2  ;;  %4872 = vmatprep.subr.bf16.mxu0 %v4871_v57 }
0x1171   :  { %4874 = vmatpush3.bf16.msra.mxu0 %v4871_v57 }
0x1172   :  { %v5213_v33 = vpop.eup %5212  ;;  %v4875_v20 = vpack.c.bf16 %v5079_v34, %v5078_v35  ;;  %4880 = vmatprep.subr.bf16.mxu0 %v4879_v28 }
0x1173   :  { %v3576_v4 = vmul.f32 %v5213_v33, %v5205_v39  ;;  %v3852_v39 = vld [vmem:[%s6208_s6 + $0x20] sm:$0xff] }
0x1174   :  { %4602 = vmatmul.mubr.msk.f32.vlgmr.msra.gmra.mrb[20].mxu0 %vm749_vm3, %v3575_v19  ;;  %4876 = vmatprep.subr.bf16.mxu1 %v4875_v20 }
0x1175   :  { %4878 = vmatpush3.bf16.msra.mxu1 %v4875_v20  ;;  %4608 = vmatprep.mubr.msk.f32.mxu1 %vm749_vm3, %v3576_v4 }
0x1176   :  { %v5215_v9 = vpop.eup %5214  ;;  %4882 = vmatpush3.bf16.msra.mxu0 %v4879_v28  ;;  %4896 = vmatprep.subr.bf16.mxu1 %v4895_v5 }
0x1177   :  { %v3577_v27 = vmul.f32 %v5215_v9, %v5207_v56  ;;  %4884 = vmatprep.subr.bf16.mxu0 %v4883_v10  ;;  %v4887_v56 = vpack.c.bf16 %v3853_v6, %v3852_v39 }
0x1179   :  { %4609 = vmatmul.mubr.msk.f32.vlgmr.msra.gmra.mrb[12].mxu1 %vm749_vm3, %v3577_v27 }
0x117a   :  { %4886 = vmatpush3.bf16.msra.mxu0 %v4883_v10  ;;  %4898 = vmatpush3.bf16.msra.mxu1 %v4895_v5  ;;  %v3986_v5 = vld [vmem:[%s6210_s8 + $0x30] sm:$0xff] }
0x117b   :  { %4888 = vmatprep.subr.bf16.mxu0 %v4887_v56  ;;  %4900 = vmatprep.subr.bf16.mxu1 %v4899_v14 }
0x117e   :  { %4890 = vmatpush3.bf16.msra.mxu0 %v4887_v56  ;;  %4902 = vmatpush3.bf16.msra.mxu1 %v4899_v14  ;;  %v4907_v14 = vpack.c.bf16 %v3987_v63, %v3986_v5 }
0x117f   :  { %4892 = vmatprep.subr.bf16.mxu0 %v4891_v15  ;;  %4904 = vmatprep.subr.bf16.mxu1 %v4903_v24 }
0x1182   :  { %4894 = vmatpush3.bf16.msra.mxu0 %v4891_v15  ;;  %4906 = vmatpush3.bf16.msra.mxu1 %v4903_v24  ;;  %v4911_v24 = vpack.c.bf16 %v3989_v7, %v3988_v36 }
0x1183   :  { %4908 = vmatprep.subr.bf16.mxu1 %v4907_v14 }
0x1186   :  { %4910 = vmatpush3.bf16.msra.mxu1 %v4907_v14 }
0x1187   :  { %4912 = vmatprep.subr.bf16.mxu1 %v4911_v24 }
0x118a   :  { %4914 = vmatpush3.bf16.msra.mxu1 %v4911_v24 }
0x1247   :  { %v4603_v45 = vpop.f32.mrb[20].mxu0 }
0x1248   :  { %v3765_v29 = vadd.f32 %v4603_v45, %v3763_v12  ;;  %v3658_v41 = vpop.f32.mrb[21].mxu0 }
0x1249   :  { %v3764_v17 = vadd.f32 %v3763_v12, %v3658_v41 }
0x124a   :  { %v6053_v3 = vadd.f32 %v5237_v53, %v3765_v29 }
0x124b   :  { %v6058_v47 = vadd.f32 %v5238_v21, %v3764_v17 }
0x124c   :  { %v4610_v48 = vpop.f32.mrb[12].mxu1  ;;  %v3775_v62 = vsel %vm65_vm0, %v6053_v3, 0.0  ;;  %v3789_v52 = vmul.f32 %v6053_v3, %v6053_v3 }
0x124d   :  { %v3767_v16 = vadd.f32 %v4610_v48, %v3763_v12  ;;  %v3747_v42 = vpop.f32.mrb[13].mxu1  ;;  %3776 = vadd.xlane.f32.xlu0 %v3775_v62  ;;  %v3772_v44 = vsel %vm65_vm0, %v6058_v47, 0.0  ;;  %v3788_v22 = vmul.f32 %v6058_v47, %v6058_v47 }
0x124e   :  { %v3766_v30 = vadd.f32 %v3763_v12, %v3747_v42  ;;  %3773 = vadd.xlane.f32.xlu1 %v3772_v44  ;;  %v3795_v38 = vsel %vm65_vm0, %v3789_v52, 0.0 }
0x124f   :  { %v3792_v31 = vsel %vm65_vm0, %v3788_v22, 0.0  ;;  %v6077_v13 = vadd.f32 %v5240_v43, %v3767_v16 }
0x1250   :  { %v6072_v11 = vadd.f32 %v5239_v40, %v3766_v30  ;;  %v6225_v40 = vsub.s32 2, %v5424_v37 }
0x1251   :  { %3793 = vadd.xlane.f32.xlu0 %v3792_v31  ;;  %v3781_v54 = vsel %vm65_vm0, %v6077_v13, 0.0  ;;  %v3791_v23 = vmul.f32 %v6077_v13, %v6077_v13 }
0x1252   :  { %3796 = vadd.xlane.f32.xlu1 %v3795_v38  ;;  %v3778_v61 = vsel %vm65_vm0, %v6072_v11, 0.0  ;;  %v3790_v25 = vmul.f32 %v6072_v11, %v6072_v11  ;;  %v3835_v43 = vrot.slane %v6045_v59, %v6225_v40 }
0x1253   :  { %v3801_v0 = vsel %vm65_vm0, %v3791_v23, 0.0  ;;  %v6226_v23 = vsub.s32 3, %v5424_v37 }
0x1254   :  { %v3798_v55 = vsel %vm65_vm0, %v3790_v25, 0.0 }
0x1255   :  { %3779 = vadd.xlane.f32.xlu0 %v3778_v61 }
0x1256   :  { %3782 = vadd.xlane.f32.xlu1 %v3781_v54 }
0x1259   :  { %3799 = vadd.xlane.f32.xlu0 %v3798_v55  ;;  %v3843_v55 = vrot.slane %v6045_v59, %v6226_v23 }
0x125a   :  { %3802 = vadd.xlane.f32.xlu1 %v3801_v0 }
0x12da   :  { %v3777_v57 = vpop.xlane.xlu0 %3776 }
0x12db   :  { %v3774_v58 = vpop.xlane.xlu1 %3773  ;;  %v3785_v2 = vmul.f32 0.015625, %v3777_v57  ;;  %v3990_v57 = vld [vmem:[%s6210_s8 + $0x50] sm:$0xff] }
0x12dc   :  { %v3784_v34 = vmul.f32 0.015625, %v3774_v58  ;;  %v3991_v58 = vld [vmem:[%s6210_s8 + $0x58] sm:$0xff] }
0x12dd   :  { %v3809_v4 = vmul.f32 %v3785_v2, %v3785_v2  ;;  %v3817_v25 = vsub.f32 %v6053_v3, %v3785_v2  ;;  %v4915_v2 = vpack.c.bf16 %v3991_v58, %v3990_v57 }
0x12de   :  { %v3808_v35 = vmul.f32 %v3784_v34, %v3784_v34  ;;  %v3794_v33 = vpop.xlane.xlu0 %3793  ;;  %v3816_v38 = vsub.f32 %v6058_v47, %v3784_v34  ;;  %v3992_v34 = vld [vmem:[%s6210_s8 + $0x60] sm:$0xff] }
0x12df   :  { %v3804_v19 = vmul.f32 0.015625, %v3794_v33  ;;  %v3797_v20 = vpop.xlane.xlu1 %3796  ;;  %4916 = vmatprep.subr.bf16.mxu1 %v4915_v2 }
0x12e0   :  { %v3805_v9 = vmul.f32 0.015625, %v3797_v20  ;;  %4918 = vmatpush3.bf16.msra.mxu1 %v4915_v2  ;;  %v3995_v20 = vld [vmem:[%s6210_s8 + $0x78] sm:$0xff] }
0x12e1   :  { %v3812_v27 = vsub.f32 %v3804_v19, %v3808_v35  ;;  %v3993_v35 = vld [vmem:[%s6210_s8 + $0x68] sm:$0xff]  ;;  %v3994_v19 = vld [vmem:[%s6210_s8 + $0x70] sm:$0xff] }
0x12e2   :  { %v3813_v26 = vsub.f32 %v3805_v9, %v3809_v4  ;;  %v3780_v12 = vpop.xlane.xlu0 %3779  ;;  %v4919_v33 = vpack.c.bf16 %v3993_v35, %v3992_v34  ;;  %v4923_v4 = vpack.c.bf16 %v3995_v20, %v3994_v19  ;;  %v4222_v9 = vld [vmem:[%s6209_s7] ss:$0 sm:$0xff]  ;;  %s5301_s7 = smov [#allocation5]  }
0x12e3   :  { %v3820_v45 = vadd.f32 1e-05, %v3812_v27  ;;  %v3786_v29 = vmul.f32 0.015625, %v3780_v12  ;;  %v3783_v41 = vpop.xlane.xlu1 %3782  ;;  %s4098_s8 = sshll.u32 %s5301_s7, 4  ;;  %s4099_s8 = int_to_ptr.vmem [resolvable:$true] %s4098_s8 }
0x12e4   :  { %v3821_v17 = vadd.f32 1e-05, %v3813_v26  ;;  %v3787_v53 = vmul.f32 0.015625, %v3783_v41  ;;  %4920 = vmatprep.subr.bf16.mxu1 %v4919_v33  ;;  %s5263_s30 = scalar_lea.vmem %s4099_s8, 512  ;;  %p5268_p9 = scmp.lt.s32.totalorder %s4099_s8, %s4099_s8 }
0x12e5   :  { %5216 = vrsqrt.f32 %v3820_v45  ;;  %v3810_v48 = vmul.f32 %v3786_v29, %v3786_v29  ;;  %v3818_v10 = vsub.f32 %v6072_v11, %v3786_v29  ;;  %4922 = vmatpush3.bf16.msra.mxu1 %v4919_v33  ;;  %p5264_p8 = scmp.ne.s32.totalorder %s4099_s8, %s5263_s30  ;;  %p5269_p10 = scmp.lt.s32.totalorder %s5263_s30, %s5263_s30 }
0x12e6   :  { %5218 = vrsqrt.f32 %v3821_v17  ;;  %v3800_v21 = vpop.xlane.xlu0 %3799  ;;  %v3811_v42 = vmul.f32 %v3787_v53, %v3787_v53  ;;  %v3819_v6 = vsub.f32 %v6077_v13, %v3787_v53  ;;  %4924 = vmatprep.subr.bf16.mxu1 %v4923_v4 }
0x12e7   :  { %v3806_v62 = vmul.f32 0.015625, %v3800_v21  ;;  %v3803_v16 = vpop.xlane.xlu1 %3802  ;;  %p5270_p11 = por %p5269_p10, %p5268_p9 }
0x12e8   :  { %v3807_v44 = vmul.f32 0.015625, %v3803_v16 }
0x12e9   :  { %v3814_v22 = vsub.f32 %v3806_v62, %v3810_v48  ;;  %4926 = vmatpush3.bf16.msra.mxu1 %v4923_v4  ;;  %p5271_p12 = pnand %p5270_p11, %p5264_p8 }
0x12ea   :  { %v3815_v52 = vsub.f32 %v3807_v44, %v3811_v42 }
0x12eb   :  { %v3822_v30 = vadd.f32 1e-05, %v3814_v22 }
0x12ec   :  { %v3823_v31 = vadd.f32 1e-05, %v3815_v52 }
0x12ed   :  { %5220 = vrsqrt.f32 %v3822_v30 }
0x12ee   :  { %5222 = vrsqrt.f32 %v3823_v31 }
0x12ef   :  { %v5217_v61 = vpop.eup %5216 }
0x12f0   :  { %v5219_v54 = vpop.eup %5218  ;;  %v3828_v0 = vmul.f32 %v5217_v61, %v3816_v38 }
0x12f1   :  { %v3829_v49 = vmul.f32 %v5219_v54, %v3817_v25 }
0x12f2   :  { %v3836_v46 = vmul.f32 %v3835_v43, %v3828_v0 }
0x12f3   :  { %v3837_v28 = vmul.f32 %v3835_v43, %v3829_v49 }
0x12f4   :  { %v3844_v51 = vadd.f32 %v3843_v55, %v3836_v46  ;;  %v6227_v46 = vsub.s32 5, %v5424_v37 }
0x12f5   :  { %v3845_v18 = vadd.f32 %v3843_v55, %v3837_v28 }
0x12f6   :  { %4627 = vmatprep.mubr.msk.f32.mxu0 %vm65_vm0, %v3844_v51  ;;  %v3999_v28 = vrot.slane %v6045_v59, %v6227_v46 }
0x12f7   :  { %v5221_v39 = vpop.eup %5220  ;;  %4628 = vmatmul.mubr.msk.f32.vlgmr.msra.gmra.mrb[34].mxu0 %vm65_vm0, %v3845_v18 }
0x12f8   :  { %v5223_v56 = vpop.eup %5222  ;;  %v3830_v1 = vmul.f32 %v5221_v39, %v3818_v10 }
0x12f9   :  { %v3831_v8 = vmul.f32 %v5223_v56, %v3819_v6 }
0x12fa   :  { %v3838_v15 = vmul.f32 %v3835_v43, %v3830_v1 }
0x12fb   :  { %v3839_v50 = vmul.f32 %v3835_v43, %v3831_v8 }
0x12fc   :  { %v3846_v60 = vadd.f32 %v3843_v55, %v3838_v15 }
0x12fd   :  { %v3847_v32 = vadd.f32 %v3843_v55, %v3839_v50 }
0x12fe   :  { %4630 = vmatprep.mubr.msk.f32.mxu0 %vm65_vm0, %v3846_v60 }
0x12ff   :  { %4631 = vmatmul.mubr.msk.f32.gmra.mrb[36].mxu0 %vm65_vm0, %v3847_v32 }
0x13ca   :  { %v4629_v27 = vpop.f32.mrb[34].mxu0 }
0x13cb   :  { %v3947_v26 = vadd.f32 %v4629_v27, %v4222_v9  ;;  %v3941_v12 = vpop.f32.mrb[35].mxu0 }
0x13cc   :  { %v3942_v45 = vadd.f32 %v4222_v9, %v3941_v12 }
0x13cd   :  { %v3965_v29 = vmul.f32 0.70710677, %v3947_v26  ;;  %v3961_v31 = vmul.f32 0.5, %v3947_v26 }
0x13ce   :  { %v3964_v41 = vmul.f32 0.70710677, %v3942_v45  ;;  %v3960_v52 = vmul.f32 0.5, %v3942_v45 }
0x13cf   :  { %5224 = verf.f32 %v3965_v29 }
0x13d0   :  { %5226 = verf.f32 %v3964_v41 }
0x13d2   :  { %v4632_v17 = vpop.f32.mrb[36].mxu0 }
0x13d3   :  { %v3957_v53 = vadd.f32 %v4632_v17, %v4222_v9  ;;  %v3951_v21 = vpop.f32.mrb[37].mxu0 }
0x13d4   :  { %v3952_v48 = vadd.f32 %v4222_v9, %v3951_v21 }
0x13d5   :  { %v3967_v62 = vmul.f32 0.70710677, %v3957_v53  ;;  %v3963_v55 = vmul.f32 0.5, %v3957_v53 }
0x13d6   :  { %v3966_v16 = vmul.f32 0.70710677, %v3952_v48  ;;  %v3962_v54 = vmul.f32 0.5, %v3952_v48 }
0x13d7   :  { %5228 = verf.f32 %v3967_v62 }
0x13d8   :  { %5230 = verf.f32 %v3966_v16 }
0x13d9   :  { %v5225_v42 = vpop.eup %5224 }
0x13da   :  { %v5227_v44 = vpop.eup %5226  ;;  %v3973_v22 = vadd.f32 1.0, %v5225_v42 }
0x13db   :  { %v3972_v30 = vadd.f32 1.0, %v5227_v44 }
0x13dc   :  { %v3977_v43 = vmul.f32 %v3973_v22, %v3961_v31 }
0x13dd   :  { %v3976_v40 = vmul.f32 %v3972_v30, %v3960_v52 }
0x13df   :  { %4665 = vmatprep.mubr.f32.mxu1 %v3976_v40 }
0x13e0   :  { %4666 = vmatmul.mubr.f32.vlgmr.msra.gmra.mrb[26].mxu1 %v3977_v43 }
0x13e1   :  { %v5229_v38 = vpop.eup %5228 }
0x13e2   :  { %v5231_v61 = vpop.eup %5230  ;;  %v3975_v25 = vadd.f32 1.0, %v5229_v38 }
0x13e3   :  { %v3974_v23 = vadd.f32 1.0, %v5231_v61 }
0x13e4   :  { %v3979_v49 = vmul.f32 %v3975_v25, %v3963_v55 }
0x13e5   :  { %v3978_v0 = vmul.f32 %v3974_v23, %v3962_v54 }
0x13e7   :  { %4668 = vmatprep.mubr.f32.mxu1 %v3978_v0 }
0x13e8   :  { %4669 = vmatmul.mubr.f32.gmra.mrb[28].mxu1 %v3979_v49 }
0x14b3   :  { %v4667_v51 = vpop.f32.mrb[26].mxu1 }
0x14b4   :  { %v4072_v18 = vadd.f32 %v4667_v51, %v3999_v28  ;;  %v4066_v10 = vpop.f32.mrb[27].mxu1 }
0x14b5   :  { %v4067_v39 = vadd.f32 %v4066_v10, %v3999_v28 }
0x14b6   :  { %v4086_v6 = vadd.f32 %v4072_v18, %v6053_v3 }
0x14b7   :  { %v4085_v56 = vadd.f32 %v4067_v39, %v6058_v47 }
0x14b8   :  { %4090 = vst.msk [vmem:[#allocation5 + $0x8] sm:$0xff] %vm65_vm0, %v4086_v6 }
0x14b9   :  { %4089 = vst.msk [vmem:[#allocation5] sm:$0xff] %vm65_vm0, %v4085_v56 }
0x14bb   :  { %v4670_v1 = vpop.f32.mrb[28].mxu1 }
0x14bc   :  { %v4082_v8 = vadd.f32 %v4670_v1, %v3999_v28  ;;  %v4076_v15 = vpop.f32.mrb[29].mxu1 }
0x14bd   :  { %v4077_v37 = vadd.f32 %v4076_v15, %v3999_v28 }
0x14be   :  { %v4088_v59 = vadd.f32 %v4082_v8, %v6077_v13 }
0x14bf   :  { %v4087_v50 = vadd.f32 %v4077_v37, %v6072_v11 }
0x14c0   :  { %4092 = vst.msk [vmem:[#allocation5 + $0x18] sm:$0xff] %vm65_vm0, %v4088_v59 }
0x14c1   :  { %4091 = vst.msk [vmem:[#allocation5 + $0x10] sm:$0xff] %vm65_vm0, %v4087_v50 }
0x14c2   :  { %5274 = shalt.err (!%p5271_p12)
}
0x14c3   :  { %s5275_s10 = scalar_lea.hbm %s6211_s9, 512 }
0x14c4   :  { %p5276_p13 = scmp.ne.s32.totalorder %s6211_s9, %s5275_s10  ;;  %p5279_p0 = scmp.lt.u32.totalorder %s5275_s10, %s6211_s9 }
0x14c6   :  { %p5281_p1 = pnand %p5279_p0, %p5276_p13 }
0x14c8   :  { %5284 = shalt.err (!%p5281_p1)
}
0x14c9   :  { %s5302_s15 = smov 128   ;;  %s5303_s16 = smov 8  }
0x14ca   :  { %4104 = dma.vmem_to_hbm [thread:$0]  %s4099_s8, 512, %s6211_s9, [#allocation4], %s5302_s15, %s5302_s15, %s5303_s16  }
0x14cb   :  { %5287 = dma.done.wait [#allocation4], 512  }
0x14cc   :  { %5288 = vsyncadd [#allocation4], 4294966784 }
0x14cd   :  { %4108 = vsyncpa [#allocation3], 1 }
0x14ce   :  { %4109 = vsyncpa [#allocation4], 1 }

</bundles_post_ra>
